<compile_context>
chip_gen: v5e
topology: v5e:2x2
jax: 0.10.0
libtpu: 0.0.40
codegen_flags: <defaults>
</compile_context>

<pallas_src>
import functools
import math

import jax
import jax.numpy as jnp
from jax.experimental import pallas as pl
from jax.experimental.pallas import tpu as pltpu


# ---------------------------------------------------------------------------
# Fused whole-model kernel
# ---------------------------------------------------------------------------
def _layernorm(x, g, b, eps):
    mean = jnp.mean(x, axis=-1, keepdims=True)
    c = x - mean
    var = jnp.mean(c * c, axis=-1, keepdims=True)
    return c * jax.lax.rsqrt(var + eps) * g + b


def _fused_model_kernel(
    x_ref, enc_w_ref, enc_b_ref, enc_g_ref, enc_bt_ref,          # encoder
    ipw_ref, ipb_ref, opw_ref, opb_ref,                          # attention
    f1w_ref, f1b_ref, f2w_ref, f2b_ref,                          # feed-forward
    l1g_ref, l1b_ref, l2g_ref, l2b_ref,                          # layer norms
    dec_w_ref, dec_b_ref,                                        # decoder
    out_ref,                                                     # output
    h_ref,                                                       # VMEM scratch (S, H)
    *, nhead, eps,
):
    layer = pl.program_id(0)

    # ---- encoder: Linear -> ReLU -> LayerNorm (first grid step only) -------
    @pl.when(layer == 0)
    def _():
        y = jnp.dot(x_ref[...], enc_w_ref[...],
                    preferred_element_type=jnp.float32) + enc_b_ref[...]
        y = jnp.maximum(y, 0.0)
        h_ref[...] = _layernorm(y, enc_g_ref[...], enc_bt_ref[...], eps)

    h = h_ref[...]                                   # (S, H) resident in VMEM
    S, H = h.shape
    dh = H // nhead
    scale = 1.0 / math.sqrt(dh)

    # ---- self attention (post-norm TransformerEncoderLayer, eval mode) -----
    qkv = jnp.dot(h, ipw_ref[0],
                  preferred_element_type=jnp.float32) + ipb_ref[0]   # (S, 3H)
    q = qkv[:, :H] * scale                           # pre-scale Q once
    k = qkv[:, H:2 * H]
    v = qkv[:, 2 * H:]

    heads = []
    for hh in range(nhead):                          # static unroll, in-VMEM lane slices
        sl = slice(hh * dh, (hh + 1) * dh)
        qh, kh, vh = q[:, sl], k[:, sl], v[:, sl]
        s = jnp.dot(qh, kh.T, preferred_element_type=jnp.float32)   # (S, S)
        m = jnp.max(s, axis=-1, keepdims=True)
        p = jnp.exp(s - m)
        p = p * pl.reciprocal(jnp.sum(p, axis=-1, keepdims=True), approx=True)
        heads.append(jnp.dot(p, vh, preferred_element_type=jnp.float32))
    attn = jnp.concatenate(heads, axis=-1)                               # (S, H)
    attn = jnp.dot(attn, opw_ref[0],
                   preferred_element_type=jnp.float32) + opb_ref[0]

    h1 = _layernorm(h + attn, l1g_ref[0], l1b_ref[0], eps)               # add + LN1

    # ---- feed-forward -------------------------------------------------------
    f = jnp.dot(h1, f1w_ref[0], preferred_element_type=jnp.float32) + f1b_ref[0]
    f = jnp.maximum(f, 0.0)
    f = jnp.dot(f, f2w_ref[0], preferred_element_type=jnp.float32) + f2b_ref[0]

    h2 = _layernorm(h1 + f, l2g_ref[0], l2b_ref[0], eps)                 # add + LN2
    h_ref[...] = h2                                  # carry to next layer

    # ---- decoder (last grid step only) --------------------------------------
    @pl.when(layer == pl.num_programs(0) - 1)
    def _():
        out_ref[...] = jnp.dot(h2, dec_w_ref[...],
                               preferred_element_type=jnp.float32) + dec_b_ref[...]


# ---------------------------------------------------------------------------
# Wrapper
# ---------------------------------------------------------------------------
def layout_transformer(x, params, nhead, out_dim, eps=1e-5):
    S, Din = x.shape
    H = params["enc_w"].shape[1]
    L = params["ipw"].shape[0]
    F = params["f1w"].shape[2]
    OutP = params["dec_w"].shape[1]                  # padded, multiple of 128

    c2 = lambda l: (0, 0)                            # constant (VMEM-resident) blocks
    c3 = lambda l: (l, 0, 0)                         # per-layer streamed blocks

    out = pl.pallas_call(
        functools.partial(_fused_model_kernel, nhead=nhead, eps=eps),
        out_shape=jax.ShapeDtypeStruct((S, OutP), jnp.float32),
        grid=(L,),
        in_specs=[
            pl.BlockSpec((S, Din), c2),              # x
            pl.BlockSpec((Din, H), c2),              # enc_w
            pl.BlockSpec((1, H), c2),                # enc_b
            pl.BlockSpec((1, H), c2),                # enc_ln_g
            pl.BlockSpec((1, H), c2),                # enc_ln_b
            pl.BlockSpec((1, H, 3 * H), c3),         # in_proj_w
            pl.BlockSpec((1, 1, 3 * H), c3),         # in_proj_b
            pl.BlockSpec((1, H, H), c3),             # out_proj_w
            pl.BlockSpec((1, 1, H), c3),             # out_proj_b
            pl.BlockSpec((1, H, F), c3),             # ff1_w
            pl.BlockSpec((1, 1, F), c3),             # ff1_b
            pl.BlockSpec((1, F, H), c3),             # ff2_w
            pl.BlockSpec((1, 1, H), c3),             # ff2_b
            pl.BlockSpec((1, 1, H), c3),             # ln1_g
            pl.BlockSpec((1, 1, H), c3),             # ln1_b
            pl.BlockSpec((1, 1, H), c3),             # ln2_g
            pl.BlockSpec((1, 1, H), c3),             # ln2_b
            pl.BlockSpec((H, OutP), c2),             # dec_w (padded)
            pl.BlockSpec((1, OutP), c2),             # dec_b (padded)
        ],
        out_specs=pl.BlockSpec((S, OutP), c2),       # constant block: written at last step
        scratch_shapes=[pltpu.VMEM((S, H), jnp.float32)],
        compiler_params=pltpu.CompilerParams(
            dimension_semantics=("arbitrary",),      # activation carried across layers
            vmem_limit_bytes=32 * 1024 * 1024,
        ),
    )(
        x,
        params["enc_w"], params["enc_b"], params["enc_ln_g"], params["enc_ln_b"],
        params["ipw"], params["ipb"], params["opw"], params["opb"],
        params["f1w"], params["f1b"], params["f2w"], params["f2b"],
        params["ln1_g"], params["ln1_b"], params["ln2_g"], params["ln2_b"],
        params["dec_w"], params["dec_b"],
    )
    return out[:, :out_dim]


# ---------------------------------------------------------------------------
# Deterministic parameter init (weights stored as in_features x out_features)
# ---------------------------------------------------------------------------
def init_params(key, input_dim, hidden, ffn, out_dim, n_layers):
    keys = iter(jax.random.split(key, 64))

    def dense(shape):
        return jax.random.normal(next(keys), shape, jnp.float32) * 0.02

    out_pad = ((out_dim + 127) // 128) * 128         # lane-dense decoder output

    params = {
        "enc_w": dense((input_dim, hidden)),
        "enc_b": dense((1, hidden)),
        "enc_ln_g": jnp.ones((1, hidden), jnp.float32),
        "enc_ln_b": jnp.zeros((1, hidden), jnp.float32),
        "dec_w": jnp.pad(dense((hidden, out_dim)), ((0, 0), (0, out_pad - out_dim))),
        "dec_b": jnp.pad(dense((1, out_dim)), ((0, 0), (0, out_pad - out_dim))),
    }

    stacked = {k: [] for k in ("ipw", "ipb", "opw", "opb", "f1w", "f1b",
                               "f2w", "f2b", "ln1_g", "ln1_b", "ln2_g", "ln2_b")}
    for _ in range(n_layers):
        stacked["ipw"].append(dense((hidden, 3 * hidden)))
        stacked["ipb"].append(dense((1, 3 * hidden)))
        stacked["opw"].append(dense((hidden, hidden)))
        stacked["opb"].append(dense((1, hidden)))
        stacked["f1w"].append(dense((hidden, ffn)))
        stacked["f1b"].append(dense((1, ffn)))
        stacked["f2w"].append(dense((ffn, hidden)))
        stacked["f2b"].append(dense((1, hidden)))
        stacked["ln1_g"].append(jnp.ones((1, hidden), jnp.float32))
        stacked["ln1_b"].append(jnp.zeros((1, hidden), jnp.float32))
        stacked["ln2_g"].append(jnp.ones((1, hidden), jnp.float32))
        stacked["ln2_b"].append(jnp.zeros((1, hidden), jnp.float32))
    for k, v in stacked.items():
        params[k] = jnp.stack(v)                     # leading dim = n_layers
    return params


# ---------------------------------------------------------------------------
# Pure-JAX reference (eval-mode semantics of the PyTorch module)
# ---------------------------------------------------------------------------
def _reference(x, params, nhead, out_dim, eps=1e-5):
    hp = jax.lax.Precision.HIGHEST
    dot = lambda a, b: jnp.dot(a, b, precision=hp)

    def ln(t, g, b):
        m = jnp.mean(t, -1, keepdims=True)
        c = t - m
        v = jnp.mean(c * c, -1, keepdims=True)
        return c * jax.lax.rsqrt(v + eps) * g + b

    h = ln(jnp.maximum(dot(x, params["enc_w"]) + params["enc_b"], 0.0),
           params["enc_ln_g"], params["enc_ln_b"])
    S, H = h.shape
    dh = H // nhead
    L = params["ipw"].shape[0]
    for i in range(L):
        qkv = dot(h, params["ipw"][i]) + params["ipb"][i]
        q, k, v = qkv[:, :H], qkv[:, H:2 * H], qkv[:, 2 * H:]
        qh = q.reshape(S, nhead, dh).transpose(1, 0, 2)
        kh = k.reshape(S, nhead, dh).transpose(1, 0, 2)
        vh = v.reshape(S, nhead, dh).transpose(1, 0, 2)
        s = jnp.einsum("hqd,hkd->hqk", qh, kh, precision=hp) / math.sqrt(dh)
        p = jax.nn.softmax(s, axis=-1)
        o = jnp.einsum("hqk,hkd->hqd", p, vh, precision=hp)
        o = o.transpose(1, 0, 2).reshape(S, H)
        a = dot(o, params["opw"][i]) + params["opb"][i]
        h = ln(h + a, params["ln1_g"][i], params["ln1_b"][i])
        f = jnp.maximum(dot(h, params["f1w"][i]) + params["f1b"][i], 0.0)
        f = dot(f, params["f2w"][i]) + params["f2b"][i]
        h = ln(h + f, params["ln2_g"][i], params["ln2_b"][i])
    return (dot(h, params["dec_w"]) + params["dec_b"])[:, :out_dim]


# ---------------------------------------------------------------------------
if __name__ == "__main__":
    # Small shapes consistent with the module (hidden divisible by nhead=8).
    SEQ, INPUT_DIM, HIDDEN, NHEAD, FFN, OUT_DIM, LAYERS = 8, 32, 128, 8, 256, 320, 6

    root = jax.random.PRNGKey(0)
    pkey, xkey = jax.random.split(root)
    params = init_params(pkey, INPUT_DIM, HIDDEN, FFN, OUT_DIM, LAYERS)
    x = jax.random.normal(xkey, (SEQ, INPUT_DIM), jnp.float32)

    fwd = jax.jit(lambda xx, pp: layout_transformer(xx, pp, nhead=NHEAD, out_dim=OUT_DIM))
    out = jax.block_until_ready(fwd(x, params))

    assert out.shape == (SEQ, OUT_DIM) and out.dtype == jnp.float32

    ref = _reference(x, params, NHEAD, OUT_DIM)
    max_err = float(jnp.max(jnp.abs(out - ref)))
    assert max_err < 5e-2, f"max abs err {max_err}"

    print("KERNEL_OK")
</pallas_src>

<mosaic_0001>
module attributes {stable_mosaic.version = 11 : i64} {
  func.func @_fused_model_kernel(%arg0: i32, %arg1: memref<8x32xf32, #tpu.memory_space<vmem>>, %arg2: memref<32x128xf32, #tpu.memory_space<vmem>>, %arg3: memref<1x128xf32, #tpu.memory_space<vmem>>, %arg4: memref<1x128xf32, #tpu.memory_space<vmem>>, %arg5: memref<1x128xf32, #tpu.memory_space<vmem>>, %arg6: memref<1x128x384xf32, #tpu.memory_space<vmem>>, %arg7: memref<1x1x384xf32, #tpu.memory_space<vmem>>, %arg8: memref<1x128x128xf32, #tpu.memory_space<vmem>>, %arg9: memref<1x1x128xf32, #tpu.memory_space<vmem>>, %arg10: memref<1x128x256xf32, #tpu.memory_space<vmem>>, %arg11: memref<1x1x256xf32, #tpu.memory_space<vmem>>, %arg12: memref<1x256x128xf32, #tpu.memory_space<vmem>>, %arg13: memref<1x1x128xf32, #tpu.memory_space<vmem>>, %arg14: memref<1x1x128xf32, #tpu.memory_space<vmem>>, %arg15: memref<1x1x128xf32, #tpu.memory_space<vmem>>, %arg16: memref<1x1x128xf32, #tpu.memory_space<vmem>>, %arg17: memref<1x1x128xf32, #tpu.memory_space<vmem>>, %arg18: memref<128x384xf32, #tpu.memory_space<vmem>>, %arg19: memref<1x384xf32, #tpu.memory_space<vmem>>, %arg20: memref<8x384xf32, #tpu.memory_space<vmem>>, %arg21: memref<8x128xf32, #tpu.memory_space<vmem>>) attributes {dimension_semantics = [#tpu.dimension_semantics<arbitrary>], iteration_bounds = array<i64: 6>, scalar_prefetch = 0 : i64, scratch_operands = 1 : i64, tpu.core_type = #tpu.core_type<tc>, window_params = [{pipeline_mode = #tpu.pipeline_mode<synchronous>, transform_indices = @transform_0, window_bounds = array<i64: 8, 32>}, {pipeline_mode = #tpu.pipeline_mode<synchronous>, transform_indices = @transform_1, window_bounds = array<i64: 32, 128>}, {pipeline_mode = #tpu.pipeline_mode<synchronous>, transform_indices = @transform_2, window_bounds = array<i64: 1, 128>}, {pipeline_mode = #tpu.pipeline_mode<synchronous>, transform_indices = @transform_3, window_bounds = array<i64: 1, 128>}, {pipeline_mode = #tpu.pipeline_mode<synchronous>, transform_indices = @transform_4, window_bounds = array<i64: 1, 128>}, {transform_indices = @transform_5, window_bounds = array<i64: 1, 128, 384>}, {transform_indices = @transform_6, window_bounds = array<i64: 1, 1, 384>}, {transform_indices = @transform_7, window_bounds = array<i64: 1, 128, 128>}, {transform_indices = @transform_8, window_bounds = array<i64: 1, 1, 128>}, {transform_indices = @transform_9, window_bounds = array<i64: 1, 128, 256>}, {transform_indices = @transform_10, window_bounds = array<i64: 1, 1, 256>}, {transform_indices = @transform_11, window_bounds = array<i64: 1, 256, 128>}, {transform_indices = @transform_12, window_bounds = array<i64: 1, 1, 128>}, {transform_indices = @transform_13, window_bounds = array<i64: 1, 1, 128>}, {transform_indices = @transform_14, window_bounds = array<i64: 1, 1, 128>}, {transform_indices = @transform_15, window_bounds = array<i64: 1, 1, 128>}, {transform_indices = @transform_16, window_bounds = array<i64: 1, 1, 128>}, {pipeline_mode = #tpu.pipeline_mode<synchronous>, transform_indices = @transform_17, window_bounds = array<i64: 128, 384>}, {pipeline_mode = #tpu.pipeline_mode<synchronous>, transform_indices = @transform_18, window_bounds = array<i64: 1, 384>}, {pipeline_mode = #tpu.pipeline_mode<synchronous>, transform_indices = @transform_19, window_bounds = array<i64: 8, 384>}]} {
    %c0_i32 = arith.constant 0 : i32
    %0 = arith.cmpi eq, %arg0, %c0_i32 : i32
    %1 = arith.extui %0 : i1 to i32
    %c0_i32_0 = arith.constant 0 : i32
    %2 = arith.cmpi ne, %1, %c0_i32_0 : i32
    scf.if %2 {
      %c0_88 = arith.constant 0 : index
      %c0_89 = arith.constant 0 : index
      %222 = vector.load %arg1[%c0_88, %c0_89] : memref<8x32xf32, #tpu.memory_space<vmem>>, vector<8x32xf32>
      %c0_90 = arith.constant 0 : index
      %c0_91 = arith.constant 0 : index
      %223 = vector.load %arg2[%c0_90, %c0_91] : memref<32x128xf32, #tpu.memory_space<vmem>>, vector<32x128xf32>
      %cst_92 = arith.constant dense<0.000000e+00> : vector<8x128xf32>
      %224 = tpu.matmul %222, %223, %cst_92 {dimension_numbers = #tpu.dot_dimension_numbers<[1], [0], [0], [1], [0, 0, 1, 1], [], []>} : vector<8x32xf32>, vector<32x128xf32>, vector<8x128xf32> -> vector<8x128xf32>
      %c0_93 = arith.constant 0 : index
      %c0_94 = arith.constant 0 : index
      %225 = vector.load %arg3[%c0_93, %c0_94] : memref<1x128xf32, #tpu.memory_space<vmem>>, vector<1x128xf32>
      %226 = vector.broadcast %225 : vector<1x128xf32> to vector<8x128xf32>
      %227 = arith.addf %224, %226 : vector<8x128xf32>
      %cst_95 = arith.constant 0.000000e+00 : f32
      %228 = vector.broadcast %cst_95 : f32 to vector<8x128xf32>
      %229 = arith.maximumf %227, %228 : vector<8x128xf32>
      %c0_96 = arith.constant 0 : index
      %c0_97 = arith.constant 0 : index
      %230 = vector.load %arg4[%c0_96, %c0_97] : memref<1x128xf32, #tpu.memory_space<vmem>>, vector<1x128xf32>
      %c0_98 = arith.constant 0 : index
      %c0_99 = arith.constant 0 : index
      %231 = vector.load %arg5[%c0_98, %c0_99] : memref<1x128xf32, #tpu.memory_space<vmem>>, vector<1x128xf32>
      %cst_100 = arith.constant dense<0.000000e+00> : vector<8xf32>
      %232 = vector.multi_reduction <add>, %229, %cst_100 [1] : vector<8x128xf32> to vector<8xf32>
      %233 = vector.shape_cast %232 : vector<8xf32> to vector<8x1xf32>
      %cst_101 = arith.constant 1.280000e+02 : f32
      %234 = vector.broadcast %cst_101 : f32 to vector<8x1xf32>
      %235 = arith.divf %233, %234 : vector<8x1xf32>
      %236 = vector.broadcast %235 : vector<8x1xf32> to vector<8x128xf32>
      %237 = arith.subf %229, %236 : vector<8x128xf32>
      %238 = arith.mulf %237, %237 : vector<8x128xf32>
      %cst_102 = arith.constant dense<0.000000e+00> : vector<8xf32>
      %239 = vector.multi_reduction <add>, %238, %cst_102 [1] : vector<8x128xf32> to vector<8xf32>
      %240 = vector.shape_cast %239 : vector<8xf32> to vector<8x1xf32>
      %cst_103 = arith.constant 1.280000e+02 : f32
      %241 = vector.broadcast %cst_103 : f32 to vector<8x1xf32>
      %242 = arith.divf %240, %241 : vector<8x1xf32>
      %cst_104 = arith.constant 9.99999974E-6 : f32
      %243 = vector.broadcast %cst_104 : f32 to vector<8x1xf32>
      %244 = arith.addf %242, %243 : vector<8x1xf32>
      %245 = math.rsqrt %244 : vector<8x1xf32>
      %246 = vector.broadcast %245 : vector<8x1xf32> to vector<8x128xf32>
      %247 = arith.mulf %237, %246 : vector<8x128xf32>
      %248 = vector.broadcast %230 : vector<1x128xf32> to vector<8x128xf32>
      %249 = arith.mulf %247, %248 : vector<8x128xf32>
      %250 = vector.broadcast %231 : vector<1x128xf32> to vector<8x128xf32>
      %251 = arith.addf %249, %250 : vector<8x128xf32>
      %c0_105 = arith.constant 0 : index
      %c0_106 = arith.constant 0 : index
      %252 = vector.load %arg21[%c0_105, %c0_106] : memref<8x128xf32, #tpu.memory_space<vmem>>, vector<8x128xf32>
      tpu.vector_store %arg21[%c0_105, %c0_106], %251 {strides = array<i32>} : memref<8x128xf32, #tpu.memory_space<vmem>>, vector<8x128xf32>,
    } else {
    }
    %c0 = arith.constant 0 : index
    %c0_1 = arith.constant 0 : index
    %3 = vector.load %arg21[%c0, %c0_1] : memref<8x128xf32, #tpu.memory_space<vmem>>, vector<8x128xf32>
    %c0_2 = arith.constant 0 : index
    %c0_3 = arith.constant 0 : index
    %c0_4 = arith.constant 0 : index
    %4 = vector.load %arg6[%c0_2, %c0_3, %c0_4] : memref<1x128x384xf32, #tpu.memory_space<vmem>>, vector<1x128x384xf32>
    %5 = vector.shape_cast %4 : vector<1x128x384xf32> to vector<128x384xf32>
    %cst = arith.constant dense<0.000000e+00> : vector<8x384xf32>
    %6 = tpu.matmul %3, %5, %cst {dimension_numbers = #tpu.dot_dimension_numbers<[1], [0], [0], [1], [0, 0, 1, 1], [], []>} : vector<8x128xf32>, vector<128x384xf32>, vector<8x384xf32> -> vector<8x384xf32>
    %c0_5 = arith.constant 0 : index
    %c0_6 = arith.constant 0 : index
    %c0_7 = arith.constant 0 : index
    %7 = vector.load %arg7[%c0_5, %c0_6, %c0_7] : memref<1x1x384xf32, #tpu.memory_space<vmem>>, vector<1x1x384xf32>
    %8 = vector.shape_cast %7 : vector<1x1x384xf32> to vector<1x384xf32>
    %9 = vector.broadcast %8 : vector<1x384xf32> to vector<8x384xf32>
    %10 = arith.addf %6, %9 : vector<8x384xf32>
    %11 = vector.extract_strided_slice %10 {offsets = [0, 0], sizes = [8, 128], strides = [1, 1]} : vector<8x384xf32> to vector<8x128xf32>
    %cst_8 = arith.constant 2.500000e-01 : f32
    %12 = vector.broadcast %cst_8 : f32 to vector<8x128xf32>
    %13 = arith.mulf %11, %12 : vector<8x128xf32>
    %14 = vector.extract_strided_slice %10 {offsets = [0, 128], sizes = [8, 128], strides = [1, 1]} : vector<8x384xf32> to vector<8x128xf32>
    %15 = vector.extract_strided_slice %10 {offsets = [0, 256], sizes = [8, 128], strides = [1, 1]} : vector<8x384xf32> to vector<8x128xf32>
    %16 = vector.extract_strided_slice %13 {offsets = [0, 0], sizes = [8, 16], strides = [1, 1]} : vector<8x128xf32> to vector<8x16xf32>
    %17 = vector.extract_strided_slice %14 {offsets = [0, 0], sizes = [8, 16], strides = [1, 1]} : vector<8x128xf32> to vector<8x16xf32>
    %18 = vector.extract_strided_slice %15 {offsets = [0, 0], sizes = [8, 16], strides = [1, 1]} : vector<8x128xf32> to vector<8x16xf32>
    %19 = tpu.transpose %17, [1, 0] : vector<8x16xf32> -> vector<16x8xf32>
    %cst_9 = arith.constant dense<0.000000e+00> : vector<8x8xf32>
    %20 = tpu.matmul %16, %19, %cst_9 {dimension_numbers = #tpu.dot_dimension_numbers<[1], [0], [0], [1], [0, 0, 1, 1], [], []>} : vector<8x16xf32>, vector<16x8xf32>, vector<8x8xf32> -> vector<8x8xf32>
    %cst_10 = arith.constant dense<0xFF800000> : vector<8xf32>
    %21 = vector.multi_reduction <maximumf>, %20, %cst_10 [1] : vector<8x8xf32> to vector<8xf32>
    %22 = vector.shape_cast %21 : vector<8xf32> to vector<8x1xf32>
    %23 = vector.broadcast %22 : vector<8x1xf32> to vector<8x8xf32>
    %24 = arith.subf %20, %23 : vector<8x8xf32>
    %25 = math.exp %24 : vector<8x8xf32>
    %cst_11 = arith.constant dense<0.000000e+00> : vector<8xf32>
    %26 = vector.multi_reduction <add>, %25, %cst_11 [1] : vector<8x8xf32> to vector<8xf32>
    %27 = vector.shape_cast %26 : vector<8xf32> to vector<8x1xf32>
    %28 = tpu.reciprocal %27 {approx = true} : vector<8x1xf32> -> vector<8x1xf32>
    %29 = vector.broadcast %28 : vector<8x1xf32> to vector<8x8xf32>
    %30 = arith.mulf %25, %29 : vector<8x8xf32>
    %cst_12 = arith.constant dense<0.000000e+00> : vector<8x16xf32>
    %31 = tpu.matmul %30, %18, %cst_12 {dimension_numbers = #tpu.dot_dimension_numbers<[1], [0], [0], [1], [0, 0, 1, 1], [], []>} : vector<8x8xf32>, vector<8x16xf32>, vector<8x16xf32> -> vector<8x16xf32>
    %32 = vector.extract_strided_slice %13 {offsets = [0, 16], sizes = [8, 16], strides = [1, 1]} : vector<8x128xf32> to vector<8x16xf32>
    %33 = vector.extract_strided_slice %14 {offsets = [0, 16], sizes = [8, 16], strides = [1, 1]} : vector<8x128xf32> to vector<8x16xf32>
    %34 = vector.extract_strided_slice %15 {offsets = [0, 16], sizes = [8, 16], strides = [1, 1]} : vector<8x128xf32> to vector<8x16xf32>
    %35 = tpu.transpose %33, [1, 0] : vector<8x16xf32> -> vector<16x8xf32>
    %cst_13 = arith.constant dense<0.000000e+00> : vector<8x8xf32>
    %36 = tpu.matmul %32, %35, %cst_13 {dimension_numbers = #tpu.dot_dimension_numbers<[1], [0], [0], [1], [0, 0, 1, 1], [], []>} : vector<8x16xf32>, vector<16x8xf32>, vector<8x8xf32> -> vector<8x8xf32>
    %cst_14 = arith.constant dense<0xFF800000> : vector<8xf32>
    %37 = vector.multi_reduction <maximumf>, %36, %cst_14 [1] : vector<8x8xf32> to vector<8xf32>
    %38 = vector.shape_cast %37 : vector<8xf32> to vector<8x1xf32>
    %39 = vector.broadcast %38 : vector<8x1xf32> to vector<8x8xf32>
    %40 = arith.subf %36, %39 : vector<8x8xf32>
    %41 = math.exp %40 : vector<8x8xf32>
    %cst_15 = arith.constant dense<0.000000e+00> : vector<8xf32>
    %42 = vector.multi_reduction <add>, %41, %cst_15 [1] : vector<8x8xf32> to vector<8xf32>
    %43 = vector.shape_cast %42 : vector<8xf32> to vector<8x1xf32>
    %44 = tpu.reciprocal %43 {approx = true} : vector<8x1xf32> -> vector<8x1xf32>
    %45 = vector.broadcast %44 : vector<8x1xf32> to vector<8x8xf32>
    %46 = arith.mulf %41, %45 : vector<8x8xf32>
    %cst_16 = arith.constant dense<0.000000e+00> : vector<8x16xf32>
    %47 = tpu.matmul %46, %34, %cst_16 {dimension_numbers = #tpu.dot_dimension_numbers<[1], [0], [0], [1], [0, 0, 1, 1], [], []>} : vector<8x8xf32>, vector<8x16xf32>, vector<8x16xf32> -> vector<8x16xf32>
    %48 = vector.extract_strided_slice %13 {offsets = [0, 32], sizes = [8, 16], strides = [1, 1]} : vector<8x128xf32> to vector<8x16xf32>
    %49 = vector.extract_strided_slice %14 {offsets = [0, 32], sizes = [8, 16], strides = [1, 1]} : vector<8x128xf32> to vector<8x16xf32>
    %50 = vector.extract_strided_slice %15 {offsets = [0, 32], sizes = [8, 16], strides = [1, 1]} : vector<8x128xf32> to vector<8x16xf32>
    %51 = tpu.transpose %49, [1, 0] : vector<8x16xf32> -> vector<16x8xf32>
    %cst_17 = arith.constant dense<0.000000e+00> : vector<8x8xf32>
    %52 = tpu.matmul %48, %51, %cst_17 {dimension_numbers = #tpu.dot_dimension_numbers<[1], [0], [0], [1], [0, 0, 1, 1], [], []>} : vector<8x16xf32>, vector<16x8xf32>, vector<8x8xf32> -> vector<8x8xf32>
    %cst_18 = arith.constant dense<0xFF800000> : vector<8xf32>
    %53 = vector.multi_reduction <maximumf>, %52, %cst_18 [1] : vector<8x8xf32> to vector<8xf32>
    %54 = vector.shape_cast %53 : vector<8xf32> to vector<8x1xf32>
    %55 = vector.broadcast %54 : vector<8x1xf32> to vector<8x8xf32>
    %56 = arith.subf %52, %55 : vector<8x8xf32>
    %57 = math.exp %56 : vector<8x8xf32>
    %cst_19 = arith.constant dense<0.000000e+00> : vector<8xf32>
    %58 = vector.multi_reduction <add>, %57, %cst_19 [1] : vector<8x8xf32> to vector<8xf32>
    %59 = vector.shape_cast %58 : vector<8xf32> to vector<8x1xf32>
    %60 = tpu.reciprocal %59 {approx = true} : vector<8x1xf32> -> vector<8x1xf32>
    %61 = vector.broadcast %60 : vector<8x1xf32> to vector<8x8xf32>
    %62 = arith.mulf %57, %61 : vector<8x8xf32>
    %cst_20 = arith.constant dense<0.000000e+00> : vector<8x16xf32>
    %63 = tpu.matmul %62, %50, %cst_20 {dimension_numbers = #tpu.dot_dimension_numbers<[1], [0], [0], [1], [0, 0, 1, 1], [], []>} : vector<8x8xf32>, vector<8x16xf32>, vector<8x16xf32> -> vector<8x16xf32>
    %64 = vector.extract_strided_slice %13 {offsets = [0, 48], sizes = [8, 16], strides = [1, 1]} : vector<8x128xf32> to vector<8x16xf32>
    %65 = vector.extract_strided_slice %14 {offsets = [0, 48], sizes = [8, 16], strides = [1, 1]} : vector<8x128xf32> to vector<8x16xf32>
    %66 = vector.extract_strided_slice %15 {offsets = [0, 48], sizes = [8, 16], strides = [1, 1]} : vector<8x128xf32> to vector<8x16xf32>
    %67 = tpu.transpose %65, [1, 0] : vector<8x16xf32> -> vector<16x8xf32>
    %cst_21 = arith.constant dense<0.000000e+00> : vector<8x8xf32>
    %68 = tpu.matmul %64, %67, %cst_21 {dimension_numbers = #tpu.dot_dimension_numbers<[1], [0], [0], [1], [0, 0, 1, 1], [], []>} : vector<8x16xf32>, vector<16x8xf32>, vector<8x8xf32> -> vector<8x8xf32>
    %cst_22 = arith.constant dense<0xFF800000> : vector<8xf32>
    %69 = vector.multi_reduction <maximumf>, %68, %cst_22 [1] : vector<8x8xf32> to vector<8xf32>
    %70 = vector.shape_cast %69 : vector<8xf32> to vector<8x1xf32>
    %71 = vector.broadcast %70 : vector<8x1xf32> to vector<8x8xf32>
    %72 = arith.subf %68, %71 : vector<8x8xf32>
    %73 = math.exp %72 : vector<8x8xf32>
    %cst_23 = arith.constant dense<0.000000e+00> : vector<8xf32>
    %74 = vector.multi_reduction <add>, %73, %cst_23 [1] : vector<8x8xf32> to vector<8xf32>
    %75 = vector.shape_cast %74 : vector<8xf32> to vector<8x1xf32>
    %76 = tpu.reciprocal %75 {approx = true} : vector<8x1xf32> -> vector<8x1xf32>
    %77 = vector.broadcast %76 : vector<8x1xf32> to vector<8x8xf32>
    %78 = arith.mulf %73, %77 : vector<8x8xf32>
    %cst_24 = arith.constant dense<0.000000e+00> : vector<8x16xf32>
    %79 = tpu.matmul %78, %66, %cst_24 {dimension_numbers = #tpu.dot_dimension_numbers<[1], [0], [0], [1], [0, 0, 1, 1], [], []>} : vector<8x8xf32>, vector<8x16xf32>, vector<8x16xf32> -> vector<8x16xf32>
    %80 = vector.extract_strided_slice %13 {offsets = [0, 64], sizes = [8, 16], strides = [1, 1]} : vector<8x128xf32> to vector<8x16xf32>
    %81 = vector.extract_strided_slice %14 {offsets = [0, 64], sizes = [8, 16], strides = [1, 1]} : vector<8x128xf32> to vector<8x16xf32>
    %82 = vector.extract_strided_slice %15 {offsets = [0, 64], sizes = [8, 16], strides = [1, 1]} : vector<8x128xf32> to vector<8x16xf32>
    %83 = tpu.transpose %81, [1, 0] : vector<8x16xf32> -> vector<16x8xf32>
    %cst_25 = arith.constant dense<0.000000e+00> : vector<8x8xf32>
    %84 = tpu.matmul %80, %83, %cst_25 {dimension_numbers = #tpu.dot_dimension_numbers<[1], [0], [0], [1], [0, 0, 1, 1], [], []>} : vector<8x16xf32>, vector<16x8xf32>, vector<8x8xf32> -> vector<8x8xf32>
    %cst_26 = arith.constant dense<0xFF800000> : vector<8xf32>
    %85 = vector.multi_reduction <maximumf>, %84, %cst_26 [1] : vector<8x8xf32> to vector<8xf32>
    %86 = vector.shape_cast %85 : vector<8xf32> to vector<8x1xf32>
    %87 = vector.broadcast %86 : vector<8x1xf32> to vector<8x8xf32>
    %88 = arith.subf %84, %87 : vector<8x8xf32>
    %89 = math.exp %88 : vector<8x8xf32>
    %cst_27 = arith.constant dense<0.000000e+00> : vector<8xf32>
    %90 = vector.multi_reduction <add>, %89, %cst_27 [1] : vector<8x8xf32> to vector<8xf32>
    %91 = vector.shape_cast %90 : vector<8xf32> to vector<8x1xf32>
    %92 = tpu.reciprocal %91 {approx = true} : vector<8x1xf32> -> vector<8x1xf32>
    %93 = vector.broadcast %92 : vector<8x1xf32> to vector<8x8xf32>
    %94 = arith.mulf %89, %93 : vector<8x8xf32>
    %cst_28 = arith.constant dense<0.000000e+00> : vector<8x16xf32>
    %95 = tpu.matmul %94, %82, %cst_28 {dimension_numbers = #tpu.dot_dimension_numbers<[1], [0], [0], [1], [0, 0, 1, 1], [], []>} : vector<8x8xf32>, vector<8x16xf32>, vector<8x16xf32> -> vector<8x16xf32>
    %96 = vector.extract_strided_slice %13 {offsets = [0, 80], sizes = [8, 16], strides = [1, 1]} : vector<8x128xf32> to vector<8x16xf32>
    %97 = vector.extract_strided_slice %14 {offsets = [0, 80], sizes = [8, 16], strides = [1, 1]} : vector<8x128xf32> to vector<8x16xf32>
    %98 = vector.extract_strided_slice %15 {offsets = [0, 80], sizes = [8, 16], strides = [1, 1]} : vector<8x128xf32> to vector<8x16xf32>
    %99 = tpu.transpose %97, [1, 0] : vector<8x16xf32> -> vector<16x8xf32>
    %cst_29 = arith.constant dense<0.000000e+00> : vector<8x8xf32>
    %100 = tpu.matmul %96, %99, %cst_29 {dimension_numbers = #tpu.dot_dimension_numbers<[1], [0], [0], [1], [0, 0, 1, 1], [], []>} : vector<8x16xf32>, vector<16x8xf32>, vector<8x8xf32> -> vector<8x8xf32>
    %cst_30 = arith.constant dense<0xFF800000> : vector<8xf32>
    %101 = vector.multi_reduction <maximumf>, %100, %cst_30 [1] : vector<8x8xf32> to vector<8xf32>
    %102 = vector.shape_cast %101 : vector<8xf32> to vector<8x1xf32>
    %103 = vector.broadcast %102 : vector<8x1xf32> to vector<8x8xf32>
    %104 = arith.subf %100, %103 : vector<8x8xf32>
    %105 = math.exp %104 : vector<8x8xf32>
    %cst_31 = arith.constant dense<0.000000e+00> : vector<8xf32>
    %106 = vector.multi_reduction <add>, %105, %cst_31 [1] : vector<8x8xf32> to vector<8xf32>
    %107 = vector.shape_cast %106 : vector<8xf32> to vector<8x1xf32>
    %108 = tpu.reciprocal %107 {approx = true} : vector<8x1xf32> -> vector<8x1xf32>
    %109 = vector.broadcast %108 : vector<8x1xf32> to vector<8x8xf32>
    %110 = arith.mulf %105, %109 : vector<8x8xf32>
    %cst_32 = arith.constant dense<0.000000e+00> : vector<8x16xf32>
    %111 = tpu.matmul %110, %98, %cst_32 {dimension_numbers = #tpu.dot_dimension_numbers<[1], [0], [0], [1], [0, 0, 1, 1], [], []>} : vector<8x8xf32>, vector<8x16xf32>, vector<8x16xf32> -> vector<8x16xf32>
    %112 = vector.extract_strided_slice %13 {offsets = [0, 96], sizes = [8, 16], strides = [1, 1]} : vector<8x128xf32> to vector<8x16xf32>
    %113 = vector.extract_strided_slice %14 {offsets = [0, 96], sizes = [8, 16], strides = [1, 1]} : vector<8x128xf32> to vector<8x16xf32>
    %114 = vector.extract_strided_slice %15 {offsets = [0, 96], sizes = [8, 16], strides = [1, 1]} : vector<8x128xf32> to vector<8x16xf32>
    %115 = tpu.transpose %113, [1, 0] : vector<8x16xf32> -> vector<16x8xf32>
    %cst_33 = arith.constant dense<0.000000e+00> : vector<8x8xf32>
    %116 = tpu.matmul %112, %115, %cst_33 {dimension_numbers = #tpu.dot_dimension_numbers<[1], [0], [0], [1], [0, 0, 1, 1], [], []>} : vector<8x16xf32>, vector<16x8xf32>, vector<8x8xf32> -> vector<8x8xf32>
    %cst_34 = arith.constant dense<0xFF800000> : vector<8xf32>
    %117 = vector.multi_reduction <maximumf>, %116, %cst_34 [1] : vector<8x8xf32> to vector<8xf32>
    %118 = vector.shape_cast %117 : vector<8xf32> to vector<8x1xf32>
    %119 = vector.broadcast %118 : vector<8x1xf32> to vector<8x8xf32>
    %120 = arith.subf %116, %119 : vector<8x8xf32>
    %121 = math.exp %120 : vector<8x8xf32>
    %cst_35 = arith.constant dense<0.000000e+00> : vector<8xf32>
    %122 = vector.multi_reduction <add>, %121, %cst_35 [1] : vector<8x8xf32> to vector<8xf32>
    %123 = vector.shape_cast %122 : vector<8xf32> to vector<8x1xf32>
    %124 = tpu.reciprocal %123 {approx = true} : vector<8x1xf32> -> vector<8x1xf32>
    %125 = vector.broadcast %124 : vector<8x1xf32> to vector<8x8xf32>
    %126 = arith.mulf %121, %125 : vector<8x8xf32>
    %cst_36 = arith.constant dense<0.000000e+00> : vector<8x16xf32>
    %127 = tpu.matmul %126, %114, %cst_36 {dimension_numbers = #tpu.dot_dimension_numbers<[1], [0], [0], [1], [0, 0, 1, 1], [], []>} : vector<8x8xf32>, vector<8x16xf32>, vector<8x16xf32> -> vector<8x16xf32>
    %128 = vector.extract_strided_slice %13 {offsets = [0, 112], sizes = [8, 16], strides = [1, 1]} : vector<8x128xf32> to vector<8x16xf32>
    %129 = vector.extract_strided_slice %14 {offsets = [0, 112], sizes = [8, 16], strides = [1, 1]} : vector<8x128xf32> to vector<8x16xf32>
    %130 = vector.extract_strided_slice %15 {offsets = [0, 112], sizes = [8, 16], strides = [1, 1]} : vector<8x128xf32> to vector<8x16xf32>
    %131 = tpu.transpose %129, [1, 0] : vector<8x16xf32> -> vector<16x8xf32>
    %cst_37 = arith.constant dense<0.000000e+00> : vector<8x8xf32>
    %132 = tpu.matmul %128, %131, %cst_37 {dimension_numbers = #tpu.dot_dimension_numbers<[1], [0], [0], [1], [0, 0, 1, 1], [], []>} : vector<8x16xf32>, vector<16x8xf32>, vector<8x8xf32> -> vector<8x8xf32>
    %cst_38 = arith.constant dense<0xFF800000> : vector<8xf32>
    %133 = vector.multi_reduction <maximumf>, %132, %cst_38 [1] : vector<8x8xf32> to vector<8xf32>
    %134 = vector.shape_cast %133 : vector<8xf32> to vector<8x1xf32>
    %135 = vector.broadcast %134 : vector<8x1xf32> to vector<8x8xf32>
    %136 = arith.subf %132, %135 : vector<8x8xf32>
    %137 = math.exp %136 : vector<8x8xf32>
    %cst_39 = arith.constant dense<0.000000e+00> : vector<8xf32>
    %138 = vector.multi_reduction <add>, %137, %cst_39 [1] : vector<8x8xf32> to vector<8xf32>
    %139 = vector.shape_cast %138 : vector<8xf32> to vector<8x1xf32>
    %140 = tpu.reciprocal %139 {approx = true} : vector<8x1xf32> -> vector<8x1xf32>
    %141 = vector.broadcast %140 : vector<8x1xf32> to vector<8x8xf32>
    %142 = arith.mulf %137, %141 : vector<8x8xf32>
    %cst_40 = arith.constant dense<0.000000e+00> : vector<8x16xf32>
    %143 = tpu.matmul %142, %130, %cst_40 {dimension_numbers = #tpu.dot_dimension_numbers<[1], [0], [0], [1], [0, 0, 1, 1], [], []>} : vector<8x8xf32>, vector<8x16xf32>, vector<8x16xf32> -> vector<8x16xf32>
    %144 = tpu.concatenate %31, %47, %63, %79, %95, %111, %127, %143 in 1 : vector<8x16xf32>, vector<8x16xf32>, vector<8x16xf32>, vector<8x16xf32>, vector<8x16xf32>, vector<8x16xf32>, vector<8x16xf32>, vector<8x16xf32> -> vector<8x128xf32>
    %c0_41 = arith.constant 0 : index
    %c0_42 = arith.constant 0 : index
    %c0_43 = arith.constant 0 : index
    %145 = vector.load %arg8[%c0_41, %c0_42, %c0_43] : memref<1x128x128xf32, #tpu.memory_space<vmem>>, vector<1x128x128xf32>
    %146 = vector.shape_cast %145 : vector<1x128x128xf32> to vector<128x128xf32>
    %cst_44 = arith.constant dense<0.000000e+00> : vector<8x128xf32>
    %147 = tpu.matmul %144, %146, %cst_44 {dimension_numbers = #tpu.dot_dimension_numbers<[1], [0], [0], [1], [0, 0, 1, 1], [], []>} : vector<8x128xf32>, vector<128x128xf32>, vector<8x128xf32> -> vector<8x128xf32>
    %c0_45 = arith.constant 0 : index
    %c0_46 = arith.constant 0 : index
    %c0_47 = arith.constant 0 : index
    %148 = vector.load %arg9[%c0_45, %c0_46, %c0_47] : memref<1x1x128xf32, #tpu.memory_space<vmem>>, vector<1x1x128xf32>
    %149 = vector.shape_cast %148 : vector<1x1x128xf32> to vector<1x128xf32>
    %150 = vector.broadcast %149 : vector<1x128xf32> to vector<8x128xf32>
    %151 = arith.addf %147, %150 : vector<8x128xf32>
    %152 = arith.addf %3, %151 : vector<8x128xf32>
    %c0_48 = arith.constant 0 : index
    %c0_49 = arith.constant 0 : index
    %c0_50 = arith.constant 0 : index
    %153 = vector.load %arg14[%c0_48, %c0_49, %c0_50] : memref<1x1x128xf32, #tpu.memory_space<vmem>>, vector<1x1x128xf32>
    %154 = vector.shape_cast %153 : vector<1x1x128xf32> to vector<1x128xf32>
    %c0_51 = arith.constant 0 : index
    %c0_52 = arith.constant 0 : index
    %c0_53 = arith.constant 0 : index
    %155 = vector.load %arg15[%c0_51, %c0_52, %c0_53] : memref<1x1x128xf32, #tpu.memory_space<vmem>>, vector<1x1x128xf32>
    %156 = vector.shape_cast %155 : vector<1x1x128xf32> to vector<1x128xf32>
    %cst_54 = arith.constant dense<0.000000e+00> : vector<8xf32>
    %157 = vector.multi_reduction <add>, %152, %cst_54 [1] : vector<8x128xf32> to vector<8xf32>
    %158 = vector.shape_cast %157 : vector<8xf32> to vector<8x1xf32>
    %cst_55 = arith.constant 1.280000e+02 : f32
    %159 = vector.broadcast %cst_55 : f32 to vector<8x1xf32>
    %160 = arith.divf %158, %159 : vector<8x1xf32>
    %161 = vector.broadcast %160 : vector<8x1xf32> to vector<8x128xf32>
    %162 = arith.subf %152, %161 : vector<8x128xf32>
    %163 = arith.mulf %162, %162 : vector<8x128xf32>
    %cst_56 = arith.constant dense<0.000000e+00> : vector<8xf32>
    %164 = vector.multi_reduction <add>, %163, %cst_56 [1] : vector<8x128xf32> to vector<8xf32>
    %165 = vector.shape_cast %164 : vector<8xf32> to vector<8x1xf32>
    %cst_57 = arith.constant 1.280000e+02 : f32
    %166 = vector.broadcast %cst_57 : f32 to vector<8x1xf32>
    %167 = arith.divf %165, %166 : vector<8x1xf32>
    %cst_58 = arith.constant 9.99999974E-6 : f32
    %168 = vector.broadcast %cst_58 : f32 to vector<8x1xf32>
    %169 = arith.addf %167, %168 : vector<8x1xf32>
    %170 = math.rsqrt %169 : vector<8x1xf32>
    %171 = vector.broadcast %170 : vector<8x1xf32> to vector<8x128xf32>
    %172 = arith.mulf %162, %171 : vector<8x128xf32>
    %173 = vector.broadcast %154 : vector<1x128xf32> to vector<8x128xf32>
    %174 = arith.mulf %172, %173 : vector<8x128xf32>
    %175 = vector.broadcast %156 : vector<1x128xf32> to vector<8x128xf32>
    %176 = arith.addf %174, %175 : vector<8x128xf32>
    %c0_59 = arith.constant 0 : index
    %c0_60 = arith.constant 0 : index
    %c0_61 = arith.constant 0 : index
    %177 = vector.load %arg10[%c0_59, %c0_60, %c0_61] : memref<1x128x256xf32, #tpu.memory_space<vmem>>, vector<1x128x256xf32>
    %178 = vector.shape_cast %177 : vector<1x128x256xf32> to vector<128x256xf32>
    %cst_62 = arith.constant dense<0.000000e+00> : vector<8x256xf32>
    %179 = tpu.matmul %176, %178, %cst_62 {dimension_numbers = #tpu.dot_dimension_numbers<[1], [0], [0], [1], [0, 0, 1, 1], [], []>} : vector<8x128xf32>, vector<128x256xf32>, vector<8x256xf32> -> vector<8x256xf32>
    %c0_63 = arith.constant 0 : index
    %c0_64 = arith.constant 0 : index
    %c0_65 = arith.constant 0 : index
    %180 = vector.load %arg11[%c0_63, %c0_64, %c0_65] : memref<1x1x256xf32, #tpu.memory_space<vmem>>, vector<1x1x256xf32>
    %181 = vector.shape_cast %180 : vector<1x1x256xf32> to vector<1x256xf32>
    %182 = vector.broadcast %181 : vector<1x256xf32> to vector<8x256xf32>
    %183 = arith.addf %179, %182 : vector<8x256xf32>
    %cst_66 = arith.constant 0.000000e+00 : f32
    %184 = vector.broadcast %cst_66 : f32 to vector<8x256xf32>
    %185 = arith.maximumf %183, %184 : vector<8x256xf32>
    %c0_67 = arith.constant 0 : index
    %c0_68 = arith.constant 0 : index
    %c0_69 = arith.constant 0 : index
    %186 = vector.load %arg12[%c0_67, %c0_68, %c0_69] : memref<1x256x128xf32, #tpu.memory_space<vmem>>, vector<1x256x128xf32>
    %187 = vector.shape_cast %186 : vector<1x256x128xf32> to vector<256x128xf32>
    %cst_70 = arith.constant dense<0.000000e+00> : vector<8x128xf32>
    %188 = tpu.matmul %185, %187, %cst_70 {dimension_numbers = #tpu.dot_dimension_numbers<[1], [0], [0], [1], [0, 0, 1, 1], [], []>} : vector<8x256xf32>, vector<256x128xf32>, vector<8x128xf32> -> vector<8x128xf32>
    %c0_71 = arith.constant 0 : index
    %c0_72 = arith.constant 0 : index
    %c0_73 = arith.constant 0 : index
    %189 = vector.load %arg13[%c0_71, %c0_72, %c0_73] : memref<1x1x128xf32, #tpu.memory_space<vmem>>, vector<1x1x128xf32>
    %190 = vector.shape_cast %189 : vector<1x1x128xf32> to vector<1x128xf32>
    %191 = vector.broadcast %190 : vector<1x128xf32> to vector<8x128xf32>
    %192 = arith.addf %188, %191 : vector<8x128xf32>
    %193 = arith.addf %176, %192 : vector<8x128xf32>
    %c0_74 = arith.constant 0 : index
    %c0_75 = arith.constant 0 : index
    %c0_76 = arith.constant 0 : index
    %194 = vector.load %arg16[%c0_74, %c0_75, %c0_76] : memref<1x1x128xf32, #tpu.memory_space<vmem>>, vector<1x1x128xf32>
    %195 = vector.shape_cast %194 : vector<1x1x128xf32> to vector<1x128xf32>
    %c0_77 = arith.constant 0 : index
    %c0_78 = arith.constant 0 : index
    %c0_79 = arith.constant 0 : index
    %196 = vector.load %arg17[%c0_77, %c0_78, %c0_79] : memref<1x1x128xf32, #tpu.memory_space<vmem>>, vector<1x1x128xf32>
    %197 = vector.shape_cast %196 : vector<1x1x128xf32> to vector<1x128xf32>
    %cst_80 = arith.constant dense<0.000000e+00> : vector<8xf32>
    %198 = vector.multi_reduction <add>, %193, %cst_80 [1] : vector<8x128xf32> to vector<8xf32>
    %199 = vector.shape_cast %198 : vector<8xf32> to vector<8x1xf32>
    %cst_81 = arith.constant 1.280000e+02 : f32
    %200 = vector.broadcast %cst_81 : f32 to vector<8x1xf32>
    %201 = arith.divf %199, %200 : vector<8x1xf32>
    %202 = vector.broadcast %201 : vector<8x1xf32> to vector<8x128xf32>
    %203 = arith.subf %193, %202 : vector<8x128xf32>
    %204 = arith.mulf %203, %203 : vector<8x128xf32>
    %cst_82 = arith.constant dense<0.000000e+00> : vector<8xf32>
    %205 = vector.multi_reduction <add>, %204, %cst_82 [1] : vector<8x128xf32> to vector<8xf32>
    %206 = vector.shape_cast %205 : vector<8xf32> to vector<8x1xf32>
    %cst_83 = arith.constant 1.280000e+02 : f32
    %207 = vector.broadcast %cst_83 : f32 to vector<8x1xf32>
    %208 = arith.divf %206, %207 : vector<8x1xf32>
    %cst_84 = arith.constant 9.99999974E-6 : f32
    %209 = vector.broadcast %cst_84 : f32 to vector<8x1xf32>
    %210 = arith.addf %208, %209 : vector<8x1xf32>
    %211 = math.rsqrt %210 : vector<8x1xf32>
    %212 = vector.broadcast %211 : vector<8x1xf32> to vector<8x128xf32>
    %213 = arith.mulf %203, %212 : vector<8x128xf32>
    %214 = vector.broadcast %195 : vector<1x128xf32> to vector<8x128xf32>
    %215 = arith.mulf %213, %214 : vector<8x128xf32>
    %216 = vector.broadcast %197 : vector<1x128xf32> to vector<8x128xf32>
    %217 = arith.addf %215, %216 : vector<8x128xf32>
    %c0_85 = arith.constant 0 : index
    %c0_86 = arith.constant 0 : index
    %218 = vector.load %arg21[%c0_85, %c0_86] : memref<8x128xf32, #tpu.memory_space<vmem>>, vector<8x128xf32>
    tpu.vector_store %arg21[%c0_85, %c0_86], %217 {strides = array<i32>} : memref<8x128xf32, #tpu.memory_space<vmem>>, vector<8x128xf32>,
    %c5_i32 = arith.constant 5 : i32
    %219 = arith.cmpi eq, %arg0, %c5_i32 : i32
    %220 = arith.extui %219 : i1 to i32
    %c0_i32_87 = arith.constant 0 : i32
    %221 = arith.cmpi ne, %220, %c0_i32_87 : i32
    scf.if %221 {
      %c0_88 = arith.constant 0 : index
      %c0_89 = arith.constant 0 : index
      %222 = vector.load %arg18[%c0_88, %c0_89] : memref<128x384xf32, #tpu.memory_space<vmem>>, vector<128x384xf32>
      %cst_90 = arith.constant dense<0.000000e+00> : vector<8x384xf32>
      %223 = tpu.matmul %217, %222, %cst_90 {dimension_numbers = #tpu.dot_dimension_numbers<[1], [0], [0], [1], [0, 0, 1, 1], [], []>} : vector<8x128xf32>, vector<128x384xf32>, vector<8x384xf32> -> vector<8x384xf32>
      %c0_91 = arith.constant 0 : index
      %c0_92 = arith.constant 0 : index
      %224 = vector.load %arg19[%c0_91, %c0_92] : memref<1x384xf32, #tpu.memory_space<vmem>>, vector<1x384xf32>
      %225 = vector.broadcast %224 : vector<1x384xf32> to vector<8x384xf32>
      %226 = arith.addf %223, %225 : vector<8x384xf32>
      %c0_93 = arith.constant 0 : index
      %c0_94 = arith.constant 0 : index
      %227 = vector.load %arg20[%c0_93, %c0_94] : memref<8x384xf32, #tpu.memory_space<vmem>>, vector<8x384xf32>
      tpu.vector_store %arg20[%c0_93, %c0_94], %226 {strides = array<i32>} : memref<8x384xf32, #tpu.memory_space<vmem>>, vector<8x384xf32>,
    } else {
    }
    return
  }
  func.func @transform_0(%arg0: i32) -> (i32, i32) {
    %c0_i32 = arith.constant 0 : i32
    %c0_i32_0 = arith.constant 0 : i32
    %c0_i32_1 = arith.constant 0 : i32
    return %c0_i32, %c0_i32_0 : i32, i32
  }
  func.func @transform_1(%arg0: i32) -> (i32, i32) {
    %c0_i32 = arith.constant 0 : i32
    %c0_i32_0 = arith.constant 0 : i32
    %c0_i32_1 = arith.constant 0 : i32
    return %c0_i32, %c0_i32_0 : i32, i32
  }
  func.func @transform_2(%arg0: i32) -> (i32, i32) {
    %c0_i32 = arith.constant 0 : i32
    %c0_i32_0 = arith.constant 0 : i32
    %c0_i32_1 = arith.constant 0 : i32
    return %c0_i32, %c0_i32_0 : i32, i32
  }
  func.func @transform_3(%arg0: i32) -> (i32, i32) {
    %c0_i32 = arith.constant 0 : i32
    %c0_i32_0 = arith.constant 0 : i32
    %c0_i32_1 = arith.constant 0 : i32
    return %c0_i32, %c0_i32_0 : i32, i32
  }
  func.func @transform_4(%arg0: i32) -> (i32, i32) {
    %c0_i32 = arith.constant 0 : i32
    %c0_i32_0 = arith.constant 0 : i32
    %c0_i32_1 = arith.constant 0 : i32
    return %c0_i32, %c0_i32_0 : i32, i32
  }
  func.func @transform_5(%arg0: i32) -> (i32, i32, i32) {
    %c0_i32 = arith.constant 0 : i32
    %c0_i32_0 = arith.constant 0 : i32
    %c0_i32_1 = arith.constant 0 : i32
    return %arg0, %c0_i32, %c0_i32_0 : i32, i32, i32
  }
  func.func @transform_6(%arg0: i32) -> (i32, i32, i32) {
    %c0_i32 = arith.constant 0 : i32
    %c0_i32_0 = arith.constant 0 : i32
    %c0_i32_1 = arith.constant 0 : i32
    return %arg0, %c0_i32, %c0_i32_0 : i32, i32, i32
  }
  func.func @transform_7(%arg0: i32) -> (i32, i32, i32) {
    %c0_i32 = arith.constant 0 : i32
    %c0_i32_0 = arith.constant 0 : i32
    %c0_i32_1 = arith.constant 0 : i32
    return %arg0, %c0_i32, %c0_i32_0 : i32, i32, i32
  }
  func.func @transform_8(%arg0: i32) -> (i32, i32, i32) {
    %c0_i32 = arith.constant 0 : i32
    %c0_i32_0 = arith.constant 0 : i32
    %c0_i32_1 = arith.constant 0 : i32
    return %arg0, %c0_i32, %c0_i32_0 : i32, i32, i32
  }
  func.func @transform_9(%arg0: i32) -> (i32, i32, i32) {
    %c0_i32 = arith.constant 0 : i32
    %c0_i32_0 = arith.constant 0 : i32
    %c0_i32_1 = arith.constant 0 : i32
    return %arg0, %c0_i32, %c0_i32_0 : i32, i32, i32
  }
  func.func @transform_10(%arg0: i32) -> (i32, i32, i32) {
    %c0_i32 = arith.constant 0 : i32
    %c0_i32_0 = arith.constant 0 : i32
    %c0_i32_1 = arith.constant 0 : i32
    return %arg0, %c0_i32, %c0_i32_0 : i32, i32, i32
  }
  func.func @transform_11(%arg0: i32) -> (i32, i32, i32) {
    %c0_i32 = arith.constant 0 : i32
    %c0_i32_0 = arith.constant 0 : i32
    %c0_i32_1 = arith.constant 0 : i32
    return %arg0, %c0_i32, %c0_i32_0 : i32, i32, i32
  }
  func.func @transform_12(%arg0: i32) -> (i32, i32, i32) {
    %c0_i32 = arith.constant 0 : i32
    %c0_i32_0 = arith.constant 0 : i32
    %c0_i32_1 = arith.constant 0 : i32
    return %arg0, %c0_i32, %c0_i32_0 : i32, i32, i32
  }
  func.func @transform_13(%arg0: i32) -> (i32, i32, i32) {
    %c0_i32 = arith.constant 0 : i32
    %c0_i32_0 = arith.constant 0 : i32
    %c0_i32_1 = arith.constant 0 : i32
    return %arg0, %c0_i32, %c0_i32_0 : i32, i32, i32
  }
  func.func @transform_14(%arg0: i32) -> (i32, i32, i32) {
    %c0_i32 = arith.constant 0 : i32
    %c0_i32_0 = arith.constant 0 : i32
    %c0_i32_1 = arith.constant 0 : i32
    return %arg0, %c0_i32, %c0_i32_0 : i32, i32, i32
  }
  func.func @transform_15(%arg0: i32) -> (i32, i32, i32) {
    %c0_i32 = arith.constant 0 : i32
    %c0_i32_0 = arith.constant 0 : i32
    %c0_i32_1 = arith.constant 0 : i32
    return %arg0, %c0_i32, %c0_i32_0 : i32, i32, i32
  }
  func.func @transform_16(%arg0: i32) -> (i32, i32, i32) {
    %c0_i32 = arith.constant 0 : i32
    %c0_i32_0 = arith.constant 0 : i32
    %c0_i32_1 = arith.constant 0 : i32
    return %arg0, %c0_i32, %c0_i32_0 : i32, i32, i32
  }
  func.func @transform_17(%arg0: i32) -> (i32, i32) {
    %c0_i32 = arith.constant 0 : i32
    %c0_i32_0 = arith.constant 0 : i32
    %c0_i32_1 = arith.constant 0 : i32
    return %c0_i32, %c0_i32_0 : i32, i32
  }
  func.func @transform_18(%arg0: i32) -> (i32, i32) {
    %c0_i32 = arith.constant 0 : i32
    %c0_i32_0 = arith.constant 0 : i32
    %c0_i32_1 = arith.constant 0 : i32
    return %c0_i32, %c0_i32_0 : i32, i32
  }
  func.func @transform_19(%arg0: i32) -> (i32, i32) {
    %c0_i32 = arith.constant 0 : i32
    %c0_i32_0 = arith.constant 0 : i32
    %c0_i32_1 = arith.constant 0 : i32
    return %c0_i32, %c0_i32_0 : i32, i32
  }
}

</mosaic_0001>

<bundles_post_ra>
// kernel: _lambda_.1
= control target key start
LH: loop header
LB: loop body
LE: loop exit
PB: predicated region body
PF: predicated region fallthrough
CT: control target
= control target key end

     0   :  { %s4326_s0 = inlined_call_operand.hbm [shape: f32[8,32], index: 0, kind: input, shape index: {}]   ;;  %s4327_s1 = inlined_call_operand.hbm [shape: f32[32,128], index: 1, kind: input, shape index: {}]   ;;  %s4328_s2 = inlined_call_operand.hbm [shape: f32[1,128], index: 2, kind: input, shape index: {}]   ;;  %s4329_s3 = inlined_call_operand.hbm [shape: f32[1,128], index: 3, kind: input, shape index: {}]   ;;  %s4330_s4 = inlined_call_operand.hbm [shape: f32[1,128], index: 4, kind: input, shape index: {}]   ;;  %s4331_s5 = inlined_call_operand.hbm [shape: f32[6,128,384], index: 5, kind: input, shape index: {}]   ;;  %s4332_s6 = inlined_call_operand.hbm [shape: f32[6,1,384], index: 6, kind: input, shape index: {}]   ;;  %s4333_s7 = inlined_call_operand.hbm [shape: f32[6,128,128], index: 7, kind: input, shape index: {}]   ;;  %s4334_s8 = inlined_call_operand.hbm [shape: f32[6,1,128], index: 8, kind: input, shape index: {}]   ;;  %s4335_s9 = inlined_call_operand.hbm [shape: f32[6,128,256], index: 9, kind: input, shape index: {}]   ;;  %s4336_s10 = inlined_call_operand.hbm [shape: f32[6,1,256], index: 10, kind: input, shape index: {}]   ;;  %s4337_s11 = inlined_call_operand.hbm [shape: f32[6,256,128], index: 11, kind: input, shape index: {}]   ;;  %s4338_s12 = inlined_call_operand.hbm [shape: f32[6,1,128], index: 12, kind: input, shape index: {}]   ;;  %s4339_s13 = inlined_call_operand.hbm [shape: f32[6,1,128], index: 13, kind: input, shape index: {}]   ;;  %s4340_s14 = inlined_call_operand.hbm [shape: f32[6,1,128], index: 14, kind: input, shape index: {}]   ;;  %s4341_s15 = inlined_call_operand.hbm [shape: f32[6,1,128], index: 15, kind: input, shape index: {}]   ;;  %s4342_s16 = inlined_call_operand.hbm [shape: f32[6,1,128], index: 16, kind: input, shape index: {}]   ;;  %s4343_s17 = inlined_call_operand.hbm [shape: f32[128,384], index: 17, kind: input, shape index: {}]   ;;  %s4344_s18 = inlined_call_operand.hbm [shape: f32[1,384], index: 18, kind: input, shape index: {}]   ;;  %s4345_s19 = inlined_call_operand.hbm [shape: f32[8,384], index: 19, kind: output, shape index: {}]  }
   0x1   :  { %4366 = sst [smem:[#allocation51_spill]] %s4326_s0 }
   0x2   :  { %4367 = sst [smem:[#allocation52_spill]] %s4327_s1 }
   0x3   :  { %4368 = sst [smem:[#allocation53_spill]] %s4328_s2 }
   0x4   :  { %4369 = sst [smem:[#allocation54_spill]] %s4329_s3 }
   0x5   :  { %4370 = sst [smem:[#allocation55_spill]] %s4330_s4 }
   0x6   :  { %4371 = sst [smem:[#allocation56_spill]] %s4331_s5 }
   0x7   :  { %4372 = sst [smem:[#allocation57_spill]] %s4333_s7 }
   0x8   :  { %4373 = sst [smem:[#allocation58_spill]] %s4336_s10 }
   0x9   :  { %4374 = sst [smem:[#allocation59_spill]] %s4338_s12 }
   0xa   :  { %4375 = sst [smem:[#allocation60_spill]] %s4340_s14 }
   0xb   :  { %4376 = sst [smem:[#allocation61_spill]] %s4342_s16 }
   0xc   :  { %4377 = sst [smem:[#allocation62_spill]] %s4345_s19 }
   0xd   :  { %24 = vsyncpa [#allocation4], 0 }
   0xe   :  { %25 = vsyncpa [#allocation7], 0 }
   0xf   :  { %26 = vsyncpa [#allocation10], 0 }
  0x10   :  { %27 = vsyncpa [#allocation13], 0 }
  0x11   :  { %29 = vsyncpa [#allocation13 + $0x1], 0 }
  0x12   :  { %30 = vsyncpa [#allocation16], 0 }
  0x13   :  { %32 = vsyncpa [#allocation16 + $0x1], 0 }
  0x14   :  { %33 = vsyncpa [#allocation19], 0 }
  0x15   :  { %35 = vsyncpa [#allocation19 + $0x1], 0 }
  0x16   :  { %36 = vsyncpa [#allocation22], 0 }
  0x17   :  { %38 = vsyncpa [#allocation22 + $0x1], 0 }
  0x18   :  { %39 = vsyncpa [#allocation25], 0 }
  0x19   :  { %41 = vsyncpa [#allocation25 + $0x1], 0 }
  0x1a   :  { %42 = vsyncpa [#allocation28], 0 }
  0x1b   :  { %44 = vsyncpa [#allocation28 + $0x1], 0 }
  0x1c   :  { %45 = vsyncpa [#allocation31], 0 }
  0x1d   :  { %46 = vsyncpa [#allocation5], 0  ;;  %s3649_s0 = smov 0   ;;  %s3651_s30 = smov 0  }
  0x1e   :  { %s3653_s20 = smov 0   ;;  %s3655_s21 = smov 0  }
  0x1f LB: > { %4378 = sst [smem:[#allocation45_spill]] %s3512_s30  ;;  %s3668_s1 = sadd.s32 4294967295, %s3520_s21   ;;  %s3520_s21 = sphi %s3655_s21, %s4414_s21   ;;  %s3516_s20 = sphi %s3653_s20, %s4418_s20   ;;  %s3512_s30 = sphi %s3651_s30, %s4417_s30   ;;  %s3508_s0 = sphi %s3649_s0, %s4415_s0  }
  0x20   : > { %4379 = sst [smem:[#allocation46_spill]] %s3668_s1  ;;  %s3671_s22 = sadd.s32 1, %s3520_s21  }
  0x21   : > { %4380 = sst [smem:[#allocation47_spill]] %s3671_s22  ;;  %s161_s2 = ssub.s32 %s3520_s21, %s3671_s22 }
  0x22   : > { %s164_s23 = sadd.s32 1, %s3516_s20  ;;  %p162_p0 = scmp.eq.s32.totalorder %s161_s2, 0 }
  0x23   : > { %p171_p1 = scmp.ne.s32.totalorder %s3516_s20, %s3512_s30  ;;  %p172_p2 = scmp.eq.s32.totalorder %s3520_s21, 0 }
  0x24   : > { %p177_p3 = scmp.ne.s32.totalorder %s3512_s30, %s3508_s0  ;;  %p178_p5 = scmp.eq.s32.totalorder %s3668_s1, 0 }
  0x25   : > { %s3681_s24 = scalar_select %p162_p0, %s3516_s20, %s164_s23  }
  0x26   : > { %p3683_p4 = por %p172_p2, %p171_p1  ;;  %p2595_p6 = scmp.ge.s32.totalorder %s3520_s21, 1 }
  0x27   : > { %4381 = sst [smem:[#allocation48_spill]] %s3681_s24  ;;  %p537_p7 = scmp.lt.s32.totalorder %s3520_s21, 7 }
  0x28   : > { %p3692_p8 = por %p178_p5, %p177_p3  ;;  %p2596_p9 = scmp.ne.s32.totalorder %s3668_s1, 0 }
  0x29   : > { %p3697_p10 = pnand %p2595_p6, %p537_p7  ;;  %s4387_s29 = sld [smem:[#allocation52_spill]] }
  0x2a   : > { %s4383_s3 = scalar_select %p3692_p8, 1, 0 }
  0x2b   : > { %s4385_s26 = scalar_select %p3697_p10, 1, 0 }
  0x2c   : > { %4384 = sst [smem:[#allocation49_spill]] %s4383_s3  ;;  %p2724_p11 = pneg %p3697_p10 }
  0x2d   : > { %4386 = sst [smem:[#allocation50_spill]] %s4385_s26  ;;  %s3522_s2 = smov [#allocation6]  }
  0x2e   : > { %s562_s23 = sshll.u32 %s3522_s2, 4  ;;  %p3708_p12 = pnand %p2724_p11, %p178_p5  ;;  %s563_s23 = int_to_ptr.vmem [resolvable:$true] %s562_s23 }
  0x2f   : > { %s560_s0 = sshll.u32 %s4387_s29, 4  ;;  %s4389_s3 = sld [smem:[#allocation54_spill]]  ;;  %s561_s0 = int_to_ptr.hbm [resolvable:$true] %s560_s0 }
  0x30   : > { %s3523_s27 = smov 128   ;;  %s3524_s28 = smov 8  }
  0x31   : > { %2730 = dma.hbm_to_vmem [thread:$0]  (!%p3708_p12), %s561_s0, 512, %s563_s23, [#allocation7], %s3523_s27, %s3523_s27, %s3524_s28  }
  0x32   : > { %s3525_s29 = smov [#allocation9]   ;;  %s610_s16 = sshll.u32 %s4343_s17, 4  ;;  %s611_s16 = int_to_ptr.hbm [resolvable:$true] %s610_s16 }
  0x33   : > { %s589_s2 = sshll.u32 %s3525_s29, 4  ;;  %s3526_s19 = smov [#allocation30]   ;;  %s590_s2 = int_to_ptr.vmem [resolvable:$true] %s589_s2 }
  0x34   : > { %s612_s22 = sshll.u32 %s3526_s19, 4  ;;  %s4390_s12 = sld [smem:[#allocation51_spill]]  ;;  %s613_s22 = int_to_ptr.vmem [resolvable:$true] %s612_s22 }
  0x35   : > { %s587_s30 = sshll.u32 %s4389_s3, 4  ;;  %s3527_s0 = smov 384   ;;  %s588_s30 = int_to_ptr.hbm [resolvable:$true] %s587_s30 }
  0x36   : > { %2736 = dma.hbm_to_vmem [thread:$0]  (!%p3708_p12), %s588_s30, 16, %s590_s2, [#allocation10]  }
  0x37   : > { %s3528_s23 = smov 24   ;;  %s3529_s1 = smov [#allocation3]  }
  0x38   : > { %2742 = dma.hbm_to_vmem [thread:$0]  (!%p3708_p12), %s611_s16, 6144, %s613_s22, [#allocation31], %s3527_s0, %s3527_s0, %s3528_s23  }
  0x39   : > { %s551_s26 = sshll.u32 %s3529_s1, 4  ;;  %s4391_s29 = sld [smem:[#allocation53_spill]]  ;;  %s552_s26 = int_to_ptr.vmem [resolvable:$true] %s551_s26 }
  0x3a   : > { %s549_s10 = sshll.u32 %s4390_s12, 4  ;;  %s4392_s4 = sld [smem:[#allocation55_spill]]  ;;  %s550_s10 = int_to_ptr.hbm [resolvable:$true] %s549_s10 }
  0x3b   : > { %2727 = dma.hbm_to_vmem [thread:$0]  (!%p3708_p12), %s550_s10, 128, %s552_s26, [#allocation4]  }
  0x3c   : > { %s3530_s19 = smov [#allocation8]   ;;  %s3531_s16 = smov [#allocation11]  }
  0x3d   : > { %s577_s3 = sshll.u32 %s3530_s19, 4  ;;  %s601_s22 = sshll.u32 %s3531_s16, 4  ;;  %s578_s3 = int_to_ptr.vmem [resolvable:$true] %s577_s3  ;;  %s602_s22 = int_to_ptr.vmem [resolvable:$true] %s601_s22 }
  0x3e   : > { %s625_s1 = sshll.u32 %s4344_s18, 4  ;;  %s3532_s10 = smov [#allocation32]   ;;  %s626_s1 = int_to_ptr.hbm [resolvable:$true] %s625_s1 }
  0x3f   : > { %s575_s30 = sshll.u32 %s4391_s29, 4  ;;  %s627_s26 = sshll.u32 %s3532_s10, 4  ;;  %s576_s30 = int_to_ptr.hbm [resolvable:$true] %s575_s30  ;;  %s628_s26 = int_to_ptr.vmem [resolvable:$true] %s627_s26 }
  0x40   : > { %s599_s12 = sshll.u32 %s4392_s4, 4  ;;  %p2603_p13 = scmp.ge.s32.totalorder %s3520_s21, 6  ;;  %s600_s12 = int_to_ptr.hbm [resolvable:$true] %s599_s12 }
  0x41   : > { %2733 = dma.hbm_to_vmem [thread:$0]  (!%p3708_p12), %s576_s30, 16, %s578_s3, [#allocation7]  }
  0x42   : > { %2739 = dma.hbm_to_vmem [thread:$0]  (!%p3708_p12), %s600_s12, 16, %s602_s22, [#allocation10]  }
  0x43   : > { %2745 = dma.hbm_to_vmem [thread:$0]  (!%p3708_p12), %s626_s1, 48, %s628_s26, [#allocation31]  }
  0x44   : > { %634 = sbr.rel (%p2603_p13) target bundleno = 276 (0x114), region = 44  ;;  %s3746_s27 = sand.u32 (!%p2603_p13), 1, %s3520_s21  }
  0x45   : > { %s3749_s28 = sand.u32 (!%p2603_p13), 1, %s3516_s20   ;;  %s2663_s30 = smul.u32 (!%p2603_p13), 384, %s3520_s21 }
  0x46   : > { %s2662_s29 = smul.u32 (!%p2603_p13), 384, %s3749_s28  ;;  %s4393_s5 = sld [smem:[#allocation56_spill]] (!%p2603_p13) }
  0x47   : > { %s4358_s16 = scalar_lea.sflag (!%p2603_p13), [#allocation13], %s3746_s27 }
  0x48   : > { %s642_s12 = scalar_lea.vmem (!%p2603_p13), [#allocation12], %s2662_s29 }
  0x49   : > { %s650_s19 = sshll.u32 %s642_s12, 4  ;;  %s651_s19 = int_to_ptr.vmem [resolvable:$true] %s650_s19 }
  0x4c   : > { %s647_s24 = scalar_lea.hbm %s4393_s5, %s2663_s30  ;;  %s3088_s10 = scalar_lea.hbm %s4393_s5, 2304 }
  0x4d   : > { %s648_s3 = sshll.u32 %s647_s24, 4  ;;  %s649_s3 = int_to_ptr.hbm [resolvable:$true] %s648_s3 }
  0x4e   : > { %s3082_s22 = sshra.s32 %s649_s3, 4  ;;  %s3083_s22 = int_to_ptr.hbm [resolvable:$true] %s3082_s22 }
  0x4f   : > { %s3084_s0 = scalar_lea.hbm %s3083_s22, 384  ;;  %p3089_p3 = scmp.lt.s32.totalorder %s3083_s22, %s4393_s5 }
  0x50   : > { %p3085_p0 = scmp.ne.s32.totalorder %s3083_s22, %s3084_s0  ;;  %p3090_p6 = scmp.lt.s32.totalorder %s3088_s10, %s3084_s0 }
  0x52   : > { %p3086_p1 = pnand %p3085_p0, %p3683_p4  ;;  %p3091_p7 = por %p3090_p6, %p3089_p3 }
  0x54   : > { %p3087_p2 = pneg %p3086_p1 }
  0x56   : > { %p3092_p11 = pnand %p3091_p7, %p3087_p2 }
  0x58   : > { %3095 = shalt.err (!%p3092_p11)
}
  0x59   : > { %s3533_s29 = smov 384   ;;  %s3534_s30 = smov 24  }
  0x5a   : > { %2682 = dma.hbm_to_vmem [thread:$0]  (%p3683_p4), %s649_s3, 6144, %s651_s19, %s4358_s16, %s3533_s29, %s3533_s29, %s3534_s30  }
  0x5b   : > { %s2605_s14 = sshll.u32 %s3749_s28, 7  ;;  %s2659_s24 = sshll.u32 %s3520_s21, 7 }
  0x5c   : > { %s4394_s7 = sld [smem:[#allocation57_spill]]  ;;  %s683_s1 = scalar_lea.vmem [#allocation15], %s2605_s14 }
  0x5d   : > { %s691_s10 = sshll.u32 %s683_s1, 4  ;;  %s4359_s26 = scalar_lea.sflag [#allocation16], %s3746_s27  ;;  %s692_s10 = int_to_ptr.vmem [resolvable:$true] %s691_s10 }
  0x62   : > { %s688_s22 = scalar_lea.hbm %s4394_s7, %s2659_s24  ;;  %s3116_s29 = scalar_lea.hbm %s4394_s7, 768 }
  0x63   : > { %s689_s0 = sshll.u32 %s688_s22, 4  ;;  %s690_s0 = int_to_ptr.hbm [resolvable:$true] %s689_s0 }
  0x64   : > { %s3110_s2 = sshra.s32 %s690_s0, 4  ;;  %s3111_s2 = int_to_ptr.hbm [resolvable:$true] %s3110_s2 }
  0x65   : > { %s3112_s4 = scalar_lea.hbm %s3111_s2, 128  ;;  %p3117_p1 = scmp.lt.s32.totalorder %s3111_s2, %s4394_s7 }
  0x66   : > { %p3113_p12 = scmp.ne.s32.totalorder %s3111_s2, %s3112_s4  ;;  %p3118_p2 = scmp.lt.s32.totalorder %s3116_s29, %s3112_s4 }
  0x68   : > { %p3114_p13 = pnand %p3113_p12, %p3683_p4  ;;  %p3119_p3 = por %p3118_p2, %p3117_p1 }
  0x6a   : > { %p3115_p0 = pneg %p3114_p13 }
  0x6c   : > { %p3120_p6 = pnand %p3119_p3, %p3115_p0 }
  0x6e   : > { %3123 = shalt.err (!%p3120_p6)
}
  0x6f   : > { %s4360_s14 = smov 128   ;;  %s4361_s24 = smov 8  }
  0x70   : > { %2684 = dma.hbm_to_vmem [thread:$0]  (%p3683_p4), %s690_s0, 2048, %s692_s10, %s4359_s26, %s4360_s14, %s4360_s14, %s4361_s24  }
  0x71   : > { %s2608_s23 = sshll.u32 %s3749_s28, 8  ;;  %s2660_s22 = sshll.u32 %s3520_s21, 8 }
  0x72   : > { %s727_s2 = scalar_lea.hbm %s4335_s9, %s2660_s22  ;;  %s722_s19 = scalar_lea.vmem [#allocation18], %s2608_s23 }
  0x73   : > { %s730_s3 = sshll.u32 %s722_s19, 4  ;;  %s728_s29 = sshll.u32 %s727_s2, 4  ;;  %s731_s3 = int_to_ptr.vmem [resolvable:$true] %s730_s3  ;;  %s729_s29 = int_to_ptr.hbm [resolvable:$true] %s728_s29 }
  0x74   : > { %s4365_s30 = scalar_lea.sflag [#allocation19], %s3746_s27  ;;  %s3138_s12 = sshra.s32 %s729_s29, 4  ;;  %s3139_s12 = int_to_ptr.hbm [resolvable:$true] %s3138_s12 }
  0x75   : > { %s3140_s16 = scalar_lea.hbm %s3139_s12, 256  ;;  %s3144_s26 = scalar_lea.hbm %s4335_s9, 1536 }
  0x76   : > { %p3141_p7 = scmp.ne.s32.totalorder %s3139_s12, %s3140_s16  ;;  %p3145_p13 = scmp.lt.s32.totalorder %s3139_s12, %s4335_s9 }
  0x77   : > { %p3146_p0 = scmp.lt.s32.totalorder %s3144_s26, %s3140_s16 }
  0x78   : > { %p3142_p11 = pnand %p3141_p7, %p3683_p4 }
  0x79   : > { %p3147_p1 = por %p3146_p0, %p3145_p13 }
  0x7a   : > { %p3143_p12 = pneg %p3142_p11 }
  0x7c   : > { %p3148_p2 = pnand %p3147_p1, %p3143_p12 }
  0x7e   : > { %3151 = shalt.err (!%p3148_p2)
}
  0x7f   : > { %s3537_s1 = smov 256   ;;  %s3538_s2 = smov 16  }
  0x80   : > { %2686 = dma.hbm_to_vmem [thread:$0]  (%p3683_p4), %s729_s29, 4096, %s731_s3, %s4365_s30, %s3537_s1, %s3537_s1, %s3538_s2  }
  0x81   : > { %s768_s10 = scalar_lea.hbm %s4337_s11, %s2660_s22  ;;  %s763_s14 = scalar_lea.vmem [#allocation21], %s2608_s23 }
  0x82   : > { %s769_s24 = sshll.u32 %s768_s10, 4  ;;  %s771_s12 = sshll.u32 %s763_s14, 4  ;;  %s770_s24 = int_to_ptr.hbm [resolvable:$true] %s769_s24  ;;  %s772_s12 = int_to_ptr.vmem [resolvable:$true] %s771_s12 }
  0x83   : > { %s4364_s16 = scalar_lea.sflag [#allocation22], %s3746_s27  ;;  %s3166_s26 = sshra.s32 %s770_s24, 4  ;;  %s3167_s26 = int_to_ptr.hbm [resolvable:$true] %s3166_s26 }
  0x84   : > { %s3168_s4 = scalar_lea.hbm %s3167_s26, 256  ;;  %s3172_s3 = scalar_lea.hbm %s4337_s11, 1536 }
  0x85   : > { %p3169_p3 = scmp.ne.s32.totalorder %s3167_s26, %s3168_s4  ;;  %p3173_p11 = scmp.lt.s32.totalorder %s3167_s26, %s4337_s11 }
  0x86   : > { %p3174_p12 = scmp.lt.s32.totalorder %s3172_s3, %s3168_s4 }
  0x87   : > { %p3170_p6 = pnand %p3169_p3, %p3683_p4 }
  0x88   : > { %p3175_p13 = por %p3174_p12, %p3173_p11 }
  0x89   : > { %p3171_p7 = pneg %p3170_p6 }
  0x8b   : > { %p3176_p0 = pnand %p3175_p13, %p3171_p7 }
  0x8d   : > { %3179 = shalt.err (!%p3176_p0)
}
  0x8e   : > { %s4395_s23 = smov 8   ;;  %s4396_s22 = smov 128  }
  0x8f   : > { %2688 = dma.hbm_to_vmem [thread:$0]  (%p3683_p4), %s770_s24, 4096, %s772_s12, %s4364_s16, %s4396_s22, %s4396_s22, %s4395_s23  }
  0x90   : > { %s804_s2 = scalar_lea.hbm %s4339_s13, %s3520_s21  ;;  %s801_s19 = scalar_lea.vmem [#allocation24], %s3749_s28 }
  0x91   : > { %s808_s0 = sshll.u32 %s801_s19, 4  ;;  %s806_s10 = sshll.u32 %s804_s2, 4  ;;  %s809_s0 = int_to_ptr.vmem [resolvable:$true] %s808_s0  ;;  %s807_s10 = int_to_ptr.hbm [resolvable:$true] %s806_s10 }
  0x92   : > { %s4363_s14 = scalar_lea.sflag [#allocation25], %s3746_s27  ;;  %s3194_s26 = sshra.s32 %s807_s10, 4  ;;  %s3195_s26 = int_to_ptr.hbm [resolvable:$true] %s3194_s26 }
  0x93   : > { %s3196_s4 = scalar_lea.hbm %s3195_s26, 1  ;;  %s3200_s24 = scalar_lea.hbm %s4339_s13, 6 }
  0x94   : > { %p3197_p1 = scmp.ne.s32.totalorder %s3195_s26, %s3196_s4  ;;  %p3201_p6 = scmp.lt.s32.totalorder %s3195_s26, %s4339_s13 }
  0x95   : > { %p3202_p7 = scmp.lt.s32.totalorder %s3200_s24, %s3196_s4 }
  0x96   : > { %p3198_p2 = pnand %p3197_p1, %p3683_p4 }
  0x97   : > { %p3203_p11 = por %p3202_p7, %p3201_p6 }
  0x98   : > { %p3199_p3 = pneg %p3198_p2 }
  0x9a   : > { %p3204_p12 = pnand %p3203_p11, %p3199_p3 }
  0x9c   : > { %3207 = shalt.err (!%p3204_p12)
}
  0x9d   : > { %2690 = dma.hbm_to_vmem [thread:$0]  (%p3683_p4), %s807_s10, 16, %s809_s0, %s4363_s14  }
  0x9e   : > { %s838_s5 = scalar_lea.hbm %s4341_s15, %s3520_s21  ;;  %s835_s2 = scalar_lea.vmem [#allocation27], %s3749_s28 }
  0x9f   : > { %s840_s7 = sshll.u32 %s838_s5, 4  ;;  %s842_s19 = sshll.u32 %s835_s2, 4  ;;  %s841_s7 = int_to_ptr.hbm [resolvable:$true] %s840_s7  ;;  %s843_s19 = int_to_ptr.vmem [resolvable:$true] %s842_s19 }
  0xa0   : > { %s4362_s26 = scalar_lea.sflag [#allocation28], %s3746_s27  ;;  %s3222_s4 = sshra.s32 %s841_s7, 4  ;;  %s3223_s4 = int_to_ptr.hbm [resolvable:$true] %s3222_s4 }
  0xa1   : > { %s3224_s3 = scalar_lea.hbm %s3223_s4, 1  ;;  %s3228_s0 = scalar_lea.hbm %s4341_s15, 6 }
  0xa2   : > { %p3225_p13 = scmp.ne.s32.totalorder %s3223_s4, %s3224_s3  ;;  %p3229_p2 = scmp.lt.s32.totalorder %s3223_s4, %s4341_s15 }
  0xa3   : > { %p3230_p3 = scmp.lt.s32.totalorder %s3228_s0, %s3224_s3 }
  0xa4   : > { %p3226_p0 = pnand %p3225_p13, %p3683_p4 }
  0xa5   : > { %p3231_p6 = por %p3230_p3, %p3229_p2 }
  0xa6   : > { %p3227_p1 = pneg %p3226_p0 }
  0xa8   : > { %p3232_p7 = pnand %p3231_p6, %p3227_p1 }
  0xaa   : > { %3235 = shalt.err (!%p3232_p7)
}
  0xab   : > { %2692 = dma.hbm_to_vmem [thread:$0]  (%p3683_p4), %s841_s7, 16, %s843_s19, %s4362_s26  }
  0xac   : > { %s2664_s1 = smul.u32 3, %s3749_s28  ;;  %s707_s2 = scalar_lea.hbm %s4334_s8, %s3520_s21 }
  0xad   : > { %s2665_s23 = smul.u32 3, %s3520_s21  ;;  %s3869_s4 = sshll.u32 %s707_s2, 4  ;;  %s710_s4 = int_to_ptr.hbm [resolvable:$true] %s3869_s4 }
  0xae   : > { %s664_s0 = scalar_lea.vmem [#allocation14], %s2664_s1  ;;  %s3256_s2 = scalar_lea.hbm %s4332_s6, 18 }
  0xaf   : > { %s668_s24 = scalar_lea.hbm %s4332_s6, %s2665_s23  ;;  %s672_s10 = sshll.u32 %s664_s0, 4  ;;  %s673_s10 = int_to_ptr.vmem [resolvable:$true] %s672_s10 }
  0xb0   : > { %s670_s12 = sshll.u32 %s668_s24, 4  ;;  %s671_s12 = int_to_ptr.hbm [resolvable:$true] %s670_s12 }
  0xb1   : > { %s3250_s7 = sshra.s32 %s671_s12, 4  ;;  %s3251_s7 = int_to_ptr.hbm [resolvable:$true] %s3250_s7 }
  0xb2   : > { %s3252_s19 = scalar_lea.hbm %s3251_s7, 3  ;;  %p3257_p0 = scmp.lt.s32.totalorder %s3251_s7, %s4332_s6 }
  0xb3   : > { %p3253_p11 = scmp.ne.s32.totalorder %s3251_s7, %s3252_s19  ;;  %p3258_p1 = scmp.lt.s32.totalorder %s3256_s2, %s3252_s19 }
  0xb5   : > { %p3254_p12 = pnand %p3253_p11, %p3683_p4  ;;  %p3259_p2 = por %p3258_p1, %p3257_p0 }
  0xb7   : > { %p3255_p13 = pneg %p3254_p12 }
  0xb9   : > { %p3260_p3 = pnand %p3259_p2, %p3255_p13 }
  0xbb   : > { %3263 = shalt.err (!%p3260_p3)
}
  0xbc   : > { %s4397_s1 = scalar_lea.sflag [#allocation13], %s3746_s27  ;;  %s704_s23 = scalar_lea.vmem [#allocation17], %s3749_s28 }
  0xbd   : > { %2683 = dma.hbm_to_vmem [thread:$0]  (%p3683_p4), %s671_s12, 48, %s673_s10, %s4397_s1  }
  0xbe   : > { %s711_s24 = sshll.u32 %s704_s23, 4  ;;  %s2611_s0 = sshll.u32 %s3749_s28, 1  ;;  %s712_s24 = int_to_ptr.vmem [resolvable:$true] %s711_s24 }
  0xbf   : > { %s3278_s22 = sshra.s32 %s710_s4, 4  ;;  %s3284_s2 = scalar_lea.hbm %s4334_s8, 6  ;;  %s3279_s22 = int_to_ptr.hbm [resolvable:$true] %s3278_s22 }
  0xc0   : > { %s3280_s7 = scalar_lea.hbm %s3279_s22, 1  ;;  %p3285_p12 = scmp.lt.s32.totalorder %s3279_s22, %s4334_s8 }
  0xc1   : > { %p3281_p6 = scmp.ne.s32.totalorder %s3279_s22, %s3280_s7  ;;  %p3286_p13 = scmp.lt.s32.totalorder %s3284_s2, %s3280_s7 }
  0xc3   : > { %p3282_p7 = pnand %p3281_p6, %p3683_p4  ;;  %p3287_p0 = por %p3286_p13, %p3285_p12 }
  0xc5   : > { %p3283_p11 = pneg %p3282_p7 }
  0xc7   : > { %p3288_p1 = pnand %p3287_p0, %p3283_p11 }
  0xc9   : > { %3291 = shalt.err (!%p3288_p1)
}
  0xca   : > { %s4398_s10 = scalar_lea.sflag [#allocation16], %s3746_s27  ;;  %s2612_s12 = sshll.u32 %s3520_s21, 1 }
  0xcb   : > { %2685 = dma.hbm_to_vmem [thread:$0]  (%p3683_p4), %s710_s4, 16, %s712_s24, %s4398_s10  }
  0xcc   : > { %s744_s1 = scalar_lea.vmem [#allocation20], %s2611_s0  ;;  %s4399_s22 = sld [smem:[#allocation58_spill]] }
  0xcd   : > { %s752_s23 = sshll.u32 %s744_s1, 4  ;;  %s4400_s26 = sld [smem:[#allocation59_spill]]  ;;  %s753_s23 = int_to_ptr.vmem [resolvable:$true] %s752_s23 }
  0xd2   : > { %s748_s7 = scalar_lea.hbm %s4399_s22, %s2612_s12  ;;  %s3312_s0 = scalar_lea.hbm %s4399_s22, 12 }
  0xd3   : > { %s750_s2 = sshll.u32 %s748_s7, 4  ;;  %s787_s14 = scalar_lea.hbm %s4400_s26, %s3520_s21  ;;  %s751_s2 = int_to_ptr.hbm [resolvable:$true] %s750_s2 }
  0xd4   : > { %s3306_s16 = sshra.s32 %s751_s2, 4  ;;  %s3307_s16 = int_to_ptr.hbm [resolvable:$true] %s3306_s16 }
  0xd5   : > { %s3308_s30 = scalar_lea.hbm %s3307_s16, 2  ;;  %p3313_p7 = scmp.lt.s32.totalorder %s3307_s16, %s4399_s22 }
  0xd6   : > { %p3309_p2 = scmp.ne.s32.totalorder %s3307_s16, %s3308_s30  ;;  %p3314_p11 = scmp.lt.s32.totalorder %s3312_s0, %s3308_s30 }
  0xd8   : > { %p3310_p3 = pnand %p3309_p2, %p3683_p4  ;;  %p3315_p12 = por %p3314_p11, %p3313_p7 }
  0xda   : > { %p3311_p6 = pneg %p3310_p3 }
  0xdc   : > { %p3316_p13 = pnand %p3315_p12, %p3311_p6 }
  0xde   : > { %3319 = shalt.err (!%p3316_p13)
}
  0xdf   : > { %s4401_s1 = scalar_lea.sflag [#allocation19], %s3746_s27  ;;  %s789_s19 = sshll.u32 %s787_s14, 4  ;;  %s790_s19 = int_to_ptr.hbm [resolvable:$true] %s789_s19 }
  0xe0   : > { %2687 = dma.hbm_to_vmem [thread:$0]  (%p3683_p4), %s751_s2, 32, %s753_s23, %s4401_s1  }
  0xe1   : > { %s784_s5 = scalar_lea.vmem [#allocation23], %s3749_s28  ;;  %s3334_s3 = sshra.s32 %s790_s19, 4  ;;  %s3335_s3 = int_to_ptr.hbm [resolvable:$true] %s3334_s3 }
  0xe2   : > { %s791_s7 = sshll.u32 %s784_s5, 4  ;;  %s3336_s29 = scalar_lea.hbm %s3335_s3, 1  ;;  %s792_s7 = int_to_ptr.vmem [resolvable:$true] %s791_s7 }
  0xe3   : > { %p3337_p0 = scmp.ne.s32.totalorder %s3335_s3, %s3336_s29  ;;  %s3340_s4 = scalar_lea.hbm %s4400_s26, 6 }
  0xe4   : > { %p3341_p3 = scmp.lt.s32.totalorder %s3335_s3, %s4400_s26  ;;  %p3342_p6 = scmp.lt.s32.totalorder %s3340_s4, %s3336_s29 }
  0xe5   : > { %p3338_p1 = pnand %p3337_p0, %p3683_p4 }
  0xe6   : > { %p3343_p7 = por %p3342_p6, %p3341_p3 }
  0xe7   : > { %p3339_p2 = pneg %p3338_p1 }
  0xe9   : > { %p3344_p11 = pnand %p3343_p7, %p3339_p2 }
  0xeb   : > { %3347 = shalt.err (!%p3344_p11)
}
  0xec   : > { %s4402_s14 = scalar_lea.sflag [#allocation22], %s3746_s27  ;;  %s4403_s10 = sld [smem:[#allocation60_spill]] }
  0xed   : > { %2689 = dma.hbm_to_vmem [thread:$0]  (%p3683_p4), %s790_s19, 16, %s792_s7, %s4402_s14  }
  0xee   : > { %s818_s5 = scalar_lea.vmem [#allocation26], %s3749_s28 }
  0xef   : > { %s825_s30 = sshll.u32 %s818_s5, 4  ;;  %s826_s30 = int_to_ptr.vmem [resolvable:$true] %s825_s30 }
  0xf2   : > { %s821_s12 = scalar_lea.hbm %s4403_s10, %s3520_s21  ;;  %s3368_s19 = scalar_lea.hbm %s4403_s10, 6 }
  0xf3   : > { %s823_s1 = sshll.u32 %s821_s12, 4  ;;  %s824_s1 = int_to_ptr.hbm [resolvable:$true] %s823_s1 }
  0xf4   : > { %s3362_s3 = sshra.s32 %s824_s1, 4  ;;  %s3363_s3 = int_to_ptr.hbm [resolvable:$true] %s3362_s3 }
  0xf5   : > { %s3364_s29 = scalar_lea.hbm %s3363_s3, 1  ;;  %p3369_p1 = scmp.lt.s32.totalorder %s3363_s3, %s4403_s10 }
  0xf6   : > { %p3365_p12 = scmp.ne.s32.totalorder %s3363_s3, %s3364_s29  ;;  %p3370_p2 = scmp.lt.s32.totalorder %s3368_s19, %s3364_s29 }
  0xf8   : > { %p3366_p13 = pnand %p3365_p12, %p3683_p4  ;;  %p3371_p3 = por %p3370_p2, %p3369_p1 }
  0xfa   : > { %p3367_p0 = pneg %p3366_p13 }
  0xfc   : > { %p3372_p6 = pnand %p3371_p3, %p3367_p0 }
  0xfe   : > { %3375 = shalt.err (!%p3372_p6)
}
  0xff   : > { %s4404_s0 = scalar_lea.sflag [#allocation25], %s3746_s27  ;;  %s4405_s2 = sld [smem:[#allocation61_spill]] }
 0x100   : > { %2691 = dma.hbm_to_vmem [thread:$0]  (%p3683_p4), %s824_s1, 16, %s826_s30, %s4404_s0  }
 0x101   : > { %s852_s16 = scalar_lea.vmem [#allocation29], %s3749_s28 }
 0x102   : > { %s859_s4 = sshll.u32 %s852_s16, 4  ;;  %s860_s4 = int_to_ptr.vmem [resolvable:$true] %s859_s4 }
 0x105   : > { %s855_s12 = scalar_lea.hbm %s4405_s2, %s3520_s21  ;;  %s3396_s1 = scalar_lea.hbm %s4405_s2, 6 }
 0x106   : > { %s857_s5 = sshll.u32 %s855_s12, 4  ;;  %s858_s5 = int_to_ptr.hbm [resolvable:$true] %s857_s5 }
 0x107   : > { %s3390_s3 = sshra.s32 %s858_s5, 4  ;;  %s3391_s3 = int_to_ptr.hbm [resolvable:$true] %s3390_s3 }
 0x108   : > { %s3392_s29 = scalar_lea.hbm %s3391_s3, 1  ;;  %p3397_p13 = scmp.lt.s32.totalorder %s3391_s3, %s4405_s2 }
 0x109   : > { %p3393_p7 = scmp.ne.s32.totalorder %s3391_s3, %s3392_s29  ;;  %p3398_p0 = scmp.lt.s32.totalorder %s3396_s1, %s3392_s29 }
 0x10b   : > { %p3394_p11 = pnand %p3393_p7, %p3683_p4  ;;  %p3399_p1 = por %p3398_p0, %p3397_p13 }
 0x10d   : > { %p3395_p12 = pneg %p3394_p11 }
 0x10f   : > { %p3400_p2 = pnand %p3399_p1, %p3395_p12 }
 0x111   : > { %3403 = shalt.err (!%p3400_p2)
}
 0x112   : > { %s4406_s21 = scalar_lea.sflag [#allocation28], %s3746_s27 }
 0x113   : > { %2693 = dma.hbm_to_vmem [thread:$0]  (%p3683_p4), %s858_s5, 16, %s860_s4, %s4406_s21  }
 0x114 PF: > { %868 = sbr.rel (%p3697_p10) target bundleno = 3159 (0xc57), region = 96  ;;  %s4408_s0 = sld [smem:[#allocation46_spill]] (!%p3697_p10) }
 0x119   : > { %3463 = dma.done.wait (%p178_p5), [#allocation4], 128  }
 0x11a   : > { %3465 = vsyncadd (%p178_p5), [#allocation4], 4294967168 }
 0x11b   : > { %3467 = dma.done.wait (%p178_p5), [#allocation7], 528  }
 0x11c   : > { %3469 = vsyncadd (%p178_p5), [#allocation7], 4294966768 }
 0x11d   : > { %3471 = dma.done.wait (%p178_p5), [#allocation10], 32  }
 0x11e   : > { %3473 = vsyncadd (%p178_p5), [#allocation10], 4294967264  ;;  %s4409_s25 = sld [smem:[#allocation45_spill]]  ;;  %s3987_s14 = sand.u32 1, %s4408_s0  }
 0x11f   : > { %s896_s5 = scalar_lea.sflag [#allocation13], %s3987_s14 }
 0x124   : > { %s3990_s23 = sand.u32 1, %s4409_s25  }
 0x125   : > { %s2666_s12 = smul.u32 384, %s3990_s23 }
 0x127   : > { %s3994_s16 = scalar_lea.vmem [#allocation12], %s2666_s12 }
 0x128   : > { %3475 = dma.done.wait (%p3692_p8), %s896_s5, 6192  }
 0x129   : > { %3477 = vsyncadd (%p3692_p8), %s896_s5, 4294961104  ;;  %s2667_s4 = smul.u32 3, %s3990_s23  ;;  %s2622_s3 = sshll.u32 %s3990_s23, 7 }
 0x12a   : > { %s916_s19 = scalar_lea.sflag [#allocation16], %s3987_s14  ;;  %s4005_s7 = scalar_lea.vmem [#allocation15], %s2622_s3 }
 0x12b   : > { %s4002_s29 = scalar_lea.vmem [#allocation14], %s2667_s4 }
 0x12c   : > { %3479 = dma.done.wait (%p3692_p8), %s916_s19, 2064  }
 0x12d   : > { %3481 = vsyncadd (%p3692_p8), %s916_s19, 4294965232  ;;  %s2623_s1 = sshll.u32 %s3990_s23, 8  ;;  %s928_s30 = scalar_lea.vmem [#allocation17], %s3990_s23 }
 0x12e   : > { %s935_s24 = scalar_lea.sflag [#allocation19], %s3987_s14  ;;  %s4014_s21 = scalar_lea.vmem [#allocation18], %s2623_s1 }
 0x12f   : > { %3483 = dma.done.wait (%p3692_p8), %s935_s24, 4128  }
 0x130   : > { %3485 = vsyncadd (%p3692_p8), %s935_s24, 4294963168  ;;  %s2624_s28 = sshll.u32 %s3990_s23, 1  ;;  %s955_s12 = scalar_lea.sflag [#allocation22], %s3987_s14 }
 0x131   : > { %s4021_s25 = scalar_lea.vmem [#allocation20], %s2624_s28  ;;  %s4024_s5 = scalar_lea.vmem [#allocation21], %s2623_s1 }
 0x132   : > { %3487 = dma.done.wait (%p3692_p8), %s955_s12, 4112  }
 0x133   : > { %3489 = vsyncadd (%p3692_p8), %s955_s12, 4294963184  ;;  %s967_s4 = scalar_lea.vmem [#allocation23], %s3990_s23  ;;  %s974_s3 = scalar_lea.sflag [#allocation25], %s3987_s14 }
 0x134   : > { %s976_s19 = scalar_lea.vmem [#allocation24], %s3990_s23 }
 0x135   : > { %3491 = dma.done.wait (%p3692_p8), %s974_s3, 32  }
 0x136   : > { %3493 = vsyncadd (%p3692_p8), %s974_s3, 4294967264  ;;  %s985_s1 = scalar_lea.vmem [#allocation26], %s3990_s23  ;;  %s992_s24 = scalar_lea.sflag [#allocation28], %s3987_s14 }
 0x137   : > { %s994_s28 = scalar_lea.vmem [#allocation27], %s3990_s23 }
 0x138   : > { %3495 = dma.done.wait (%p3692_p8), %s992_s24, 32  }
 0x139   : > { %3497 = vsyncadd (%p3692_p8), %s992_s24, 4294967264  ;;  %s1003_s12 = scalar_lea.vmem [#allocation29], %s3990_s23 }
 0x13a   : > { %3499 = dma.done.wait (%p178_p5), [#allocation31], 6192  }
 0x13b   : > { %3501 = vsyncadd (%p178_p5), [#allocation31], 4294961104  ;;  %1116 = sbr.rel (%p2596_p9) target bundleno = 725 (0x2d5), region = 176 }
 0x140   : > { %v1121_v0 = vld [vmem:[#allocation6 + $0x18] sm:$0xff]  ;;  %v1120_v1 = vld [vmem:[#allocation6 + $0x10] sm:$0xff]  ;;  %v1119_v2 = vld [vmem:[#allocation6 + $0x8] sm:$0xff]  ;;  %vm1126_vm0 = vcmask 261120   ;;  %v3539_v9 = vmov 128.0  }
 0x141   : > { %1142 = vmatpush.msra.mxu0 %v1121_v0  ;;  %v1118_v3 = vld [vmem:[#allocation6] sm:$0xff]  ;;  %v1117_v4 = vld [vmem:[#allocation3] sm:$0xff]  ;;  %2824 = vrcp.f32 %v3539_v9 }
 0x142   : > { %v2821_v5 = vld [vmem:[#allocation8] ss:$0 sm:$0xff]  ;;  %v2822_v29 = vld [vmem:[#allocation9] ss:$0 sm:$0xff]  ;;  %v2823_v31 = vld [vmem:[#allocation11] ss:$0 sm:$0xff] }
 0x143   : > { %1143 = vmatpush.msra.mxu0 %v1120_v1 }
 0x145   : > { %1144 = vmatpush.msra.mxu0 %v1119_v2 }
 0x147   : > { %1145 = vmatpush.msra.mxu0 %v1118_v3  ;;  %v2825_v10 = vpop.eup %2824 }
 0x148   : > { %2629 = vmatmul.msk.f32.vlgmr.msra.gmra.mxu0 %vm1126_vm0, %v1117_v4  ;;  %v1156_v11 = vmul.f32 128.0, %v2825_v10  ;;  %vm1160_vm1 = vweird.f32 %v2825_v10 }
 0x14a   : > { %v1157_v12 = vsub.f32 1.0, %v1156_v11 }
 0x14c   : > { %v1158_v13 = vmul.f32 %v2825_v10, %v1157_v12 }
 0x14e   : > { %v1159_v14 = vadd.f32 %v2825_v10, %v1158_v13 }
 0x150   : > { %v1161_v15 = vsel %vm1160_vm1, %v2825_v10, %v1159_v14 }
 0x1c5   : > { %v1147_v6 = vpop.f32.mrf.mxu0 }
 0x1c6   : > { %v1148_v7 = vadd.f32 %v2821_v5, %v1147_v6 }
 0x1c8   : > { %v1150_v8 = vmax.f32 %v1148_v7, 0.0 }
 0x1ca   : > { %1153 = vadd.xlane.f32.xlu0 %v1150_v8 }
 0x23d   : > { %v1154_v16 = vpop.xlane.xlu0 %1153 }
 0x23e   : > { %v1162_v17 = vmul.f32 %v1161_v15, %v1154_v16 }
 0x240   : > { %v1163_v18 = vsub.f32 %v1150_v8, %v1162_v17 }
 0x242   : > { %v1164_v19 = vmul.f32 %v1163_v18, %v1163_v18 }
 0x244   : > { %1165 = vadd.xlane.f32.xlu0 %v1164_v19 }
 0x2b7   : > { %v1166_v20 = vpop.xlane.xlu0 %1165 }
 0x2b8   : > { %v1167_v21 = vmul.f32 %v1166_v20, %v1161_v15 }
 0x2ba   : > { %v1168_v22 = vadd.f32 1e-05, %v1167_v21 }
 0x2bc   : > { %2826 = vrsqrt.f32 %v1168_v22  ;;  %vm1175_vm3 = vweird.f32 %v1168_v22 }
 0x2c2   : > { %v2827_v23 = vpop.eup %2826 }
 0x2c3   : > { %v1170_v24 = vmul.f32 %v2827_v23, %v1168_v22  ;;  %vm1176_vm2 = vweird.f32 %v2827_v23 }
 0x2c4   : > { %vm1177_vm4 = vmor %vm1175_vm3, %vm1176_vm2 }
 0x2c5   : > { %v1171_v25 = vmul.f32 %v2827_v23, %v1170_v24 }
 0x2c7   : > { %v1172_v26 = vmul.f32 0.5, %v1171_v25 }
 0x2c9   : > { %v1173_v27 = vsub.f32 1.5, %v1172_v26 }
 0x2cb   : > { %v1174_v28 = vmul.f32 %v2827_v23, %v1173_v27 }
 0x2cd   : > { %v1178_v30 = vsel %vm1177_vm4, %v2827_v23, %v1174_v28 }
 0x2ce   : > { %v1179_v32 = vmul.f32 %v1178_v30, %v1163_v18 }
 0x2d0   : > { %v1183_v33 = vmul.f32 %v2822_v29, %v1179_v32 }
 0x2d2   : > { %v1187_v34 = vadd.f32 %v2823_v31, %v1183_v33 }
 0x2d4   : > { %1188 = vst [vmem:[#allocation2] sm:$0xff] %v1187_v34 }
 0x2d5 PF: > { %v1236_v35 = vld [vmem:[%s3994_s16 + $0x170] sm:$0xff]  ;;  %v1235_v36 = vld [vmem:[%s3994_s16 + $0x168] sm:$0xff]  ;;  %v1233_v37 = vld [vmem:[%s3994_s16 + $0x158] sm:$0xff]  ;;  %vm1307_vm5 = vcmask 130048   ;;  %s3540_s0 = smov 96   ;;  %s3541_s27 = smov 112  }
 0x2d6   : > { %1266 = vmatpush.msra.mxu1 %v1236_v35  ;;  %1246 = vmatpush.msra.mxu0 %v1235_v36  ;;  %v1237_v38 = vld [vmem:[%s3994_s16 + $0x178] sm:$0xff]  ;;  %v1232_v39 = vld [vmem:[%s3994_s16 + $0x150] sm:$0xff]  ;;  %v1230_v40 = vld [vmem:[%s3994_s16 + $0x140] sm:$0xff]  ;;  %s3542_s14 = smov 80   ;;  %s3545_s3 = smov 16   ;;  %vm1334_vm6 = vcmask 64512  }
 0x2d7   : > { %1286 = vmatpush.msra.mxu2 %v1237_v38  ;;  %v1234_v41 = vld [vmem:[%s3994_s16 + $0x160] sm:$0xff]  ;;  %v1229_v42 = vld [vmem:[%s3994_s16 + $0x138] sm:$0xff]  ;;  %v1231_v43 = vld [vmem:[%s3994_s16 + $0x148] sm:$0xff]  ;;  %s3546_s24 = smov 32   ;;  %vm1854_vm7 = vcmask 261120   ;;  %vm1856_vm8 = vcmask 392192  }
 0x2d8   : > { %1267 = vmatpush.msra.mxu1 %v1233_v37  ;;  %1247 = vmatpush.msra.mxu0 %v1232_v39  ;;  %v1227_v44 = vld [vmem:[%s3994_s16 + $0x128] sm:$0xff]  ;;  %v1226_v45 = vld [vmem:[%s3994_s16 + $0x120] sm:$0xff]  ;;  %v1228_v46 = vld [vmem:[%s3994_s16 + $0x130] sm:$0xff]  ;;  %vm1858_vm9 = vcmask 523264   ;;  %vm1860_vm10 = vcmask 654336   ;;  %vm1862_vm11 = vcmask 785408  }
 0x2d9   : > { %1287 = vmatpush.msra.mxu2 %v1234_v41  ;;  %v1224_v47 = vld [vmem:[%s3994_s16 + $0x110] sm:$0xff]  ;;  %v1223_v48 = vld [vmem:[%s3994_s16 + $0x108] sm:$0xff]  ;;  %v1225_v49 = vld [vmem:[%s3994_s16 + $0x118] sm:$0xff]  ;;  %vm1864_vm12 = vcmask 916480  }
 0x2da   : > { %1268 = vmatpush.msra.mxu1 %v1230_v40  ;;  %1248 = vmatpush.msra.mxu0 %v1229_v42  ;;  %v1221_v50 = vld [vmem:[%s3994_s16 + $0xf8] sm:$0xff]  ;;  %v1220_v51 = vld [vmem:[%s3994_s16 + $0xf0] sm:$0xff]  ;;  %v1222_v52 = vld [vmem:[%s3994_s16 + $0x100] sm:$0xff] }
 0x2db   : > { %1288 = vmatpush.msra.mxu2 %v1231_v43  ;;  %v1218_v53 = vld [vmem:[%s3994_s16 + $0xe0] sm:$0xff]  ;;  %v1217_v54 = vld [vmem:[%s3994_s16 + $0xd8] sm:$0xff]  ;;  %v1219_v55 = vld [vmem:[%s3994_s16 + $0xe8] sm:$0xff] }
 0x2dc   : > { %1269 = vmatpush.msra.mxu1 %v1227_v44  ;;  %1249 = vmatpush.msra.mxu0 %v1226_v45  ;;  %v1215_v56 = vld [vmem:[%s3994_s16 + $0xc8] sm:$0xff]  ;;  %v1214_v57 = vld [vmem:[%s3994_s16 + $0xc0] sm:$0xff]  ;;  %v1216_v58 = vld [vmem:[%s3994_s16 + $0xd0] sm:$0xff] }
 0x2dd   : > { %1289 = vmatpush.msra.mxu2 %v1228_v46  ;;  %v1212_v59 = vld [vmem:[%s3994_s16 + $0xb0] sm:$0xff]  ;;  %v1211_v60 = vld [vmem:[%s3994_s16 + $0xa8] sm:$0xff]  ;;  %v1209_v61 = vld [vmem:[%s3994_s16 + $0x98] sm:$0xff] }
 0x2de   : > { %1270 = vmatpush.msra.mxu1 %v1224_v47  ;;  %1250 = vmatpush.msra.mxu0 %v1223_v48  ;;  %v1213_v62 = vld [vmem:[%s3994_s16 + $0xb8] sm:$0xff]  ;;  %v1208_v63 = vld [vmem:[%s3994_s16 + $0x90] sm:$0xff]  ;;  %v1206_v0 = vld [vmem:[%s3994_s16 + $0x80] sm:$0xff] }
 0x2df   : > { %1290 = vmatpush.msra.mxu2 %v1225_v49  ;;  %v1210_v1 = vld [vmem:[%s3994_s16 + $0xa0] sm:$0xff]  ;;  %v1205_v2 = vld [vmem:[%s3994_s16 + $0x78] sm:$0xff]  ;;  %v1207_v3 = vld [vmem:[%s3994_s16 + $0x88] sm:$0xff] }
 0x2e0   : > { %1271 = vmatpush.msra.mxu1 %v1221_v50  ;;  %1251 = vmatpush.msra.mxu0 %v1220_v51  ;;  %v1203_v4 = vld [vmem:[%s3994_s16 + $0x68] sm:$0xff]  ;;  %v1202_v5 = vld [vmem:[%s3994_s16 + $0x60] sm:$0xff]  ;;  %v1204_v6 = vld [vmem:[%s3994_s16 + $0x70] sm:$0xff] }
 0x2e1   : > { %1291 = vmatpush.msra.mxu2 %v1222_v52  ;;  %v1200_v7 = vld [vmem:[%s3994_s16 + $0x50] sm:$0xff]  ;;  %v1199_v8 = vld [vmem:[%s3994_s16 + $0x48] sm:$0xff]  ;;  %v1201_v9 = vld [vmem:[%s3994_s16 + $0x58] sm:$0xff] }
 0x2e2   : > { %1272 = vmatpush.msra.mxu1 %v1218_v53  ;;  %1252 = vmatpush.msra.mxu0 %v1217_v54  ;;  %v1197_v10 = vld [vmem:[%s3994_s16 + $0x38] sm:$0xff]  ;;  %v1196_v11 = vld [vmem:[%s3994_s16 + $0x30] sm:$0xff]  ;;  %v1198_v12 = vld [vmem:[%s3994_s16 + $0x40] sm:$0xff] }
 0x2e3   : > { %1292 = vmatpush.msra.mxu2 %v1219_v55  ;;  %v1194_v13 = vld [vmem:[%s3994_s16 + $0x20] sm:$0xff]  ;;  %v1193_v14 = vld [vmem:[%s3994_s16 + $0x18] sm:$0xff]  ;;  %v1195_v15 = vld [vmem:[%s3994_s16 + $0x28] sm:$0xff] }
 0x2e4   : > { %1273 = vmatpush.msra.mxu1 %v1215_v56  ;;  %1253 = vmatpush.msra.mxu0 %v1214_v57  ;;  %v1191_v16 = vld [vmem:[%s3994_s16 + $0x8] sm:$0xff]  ;;  %v1190_v17 = vld [vmem:[%s3994_s16] sm:$0xff]  ;;  %v1192_v19 = vld [vmem:[%s3994_s16 + $0x10] sm:$0xff]  ;;  %s3543_s16 = smov 48  }
 0x2e5   : > { %1293 = vmatpush.msra.mxu2 %v1216_v58  ;;  %v4098_v18 = vld [vmem:[#allocation2] sm:$0xff]  ;;  %v1238_v20 = vld [vmem:[%s4002_s29] sm:$0x7]  ;;  %s3544_s29 = smov 64  }
 0x2e6   : > { %1274 = vmatpush.msra.mxu1 %v1212_v59  ;;  %1254 = vmatpush.msra.mxu0 %v1211_v60  ;;  %v1241_v21 = vperm.slane %v1238_v20, 1  ;;  %v1240_v22 = vperm.slane %v1238_v20, 0  ;;  %v1242_v28 = vperm.slane %v1238_v20, 2 }
 0x2e7   : > { %1294 = vmatpush.msra.mxu2 %v1213_v62 }
 0x2e8   : > { %1275 = vmatpush.msra.mxu1 %v1209_v61  ;;  %1255 = vmatpush.msra.mxu0 %v1208_v63 }
 0x2e9   : > { %1295 = vmatpush.msra.mxu2 %v1210_v1 }
 0x2ea   : > { %1276 = vmatpush.msra.mxu1 %v1206_v0  ;;  %1256 = vmatpush.msra.mxu0 %v1205_v2 }
 0x2eb   : > { %1296 = vmatpush.msra.mxu2 %v1207_v3 }
 0x2ec   : > { %1277 = vmatpush.msra.mxu1 %v1203_v4  ;;  %1257 = vmatpush.msra.mxu0 %v1202_v5 }
 0x2ed   : > { %1297 = vmatpush.msra.mxu2 %v1204_v6 }
 0x2ee   : > { %1278 = vmatpush.msra.mxu1 %v1200_v7  ;;  %1258 = vmatpush.msra.mxu0 %v1199_v8 }
 0x2ef   : > { %1298 = vmatpush.msra.mxu2 %v1201_v9 }
 0x2f0   : > { %1279 = vmatpush.msra.mxu1 %v1197_v10  ;;  %1259 = vmatpush.msra.mxu0 %v1196_v11 }
 0x2f1   : > { %1299 = vmatpush.msra.mxu2 %v1198_v12 }
 0x2f2   : > { %1280 = vmatpush.msra.mxu1 %v1194_v13  ;;  %1260 = vmatpush.msra.mxu0 %v1193_v14 }
 0x2f3   : > { %1300 = vmatpush.msra.mxu2 %v1195_v15 }
 0x2f4   : > { %1281 = vmatpush.msra.mxu1 %v1191_v16  ;;  %1261 = vmatpush.msra.mxu0 %v1190_v17 }
 0x2f5   : > { %1282 = vmatmul.f32.vlgmr.msra.gmra.mxu1 %v4098_v18  ;;  %1262 = vmatmul.f32.vlgmr.msra.gmra.mxu0 %v4098_v18 }
 0x2f6   : > { %1301 = vmatpush.msra.mxu2 %v1192_v19 }
 0x2f7   : > { %1302 = vmatmul.f32.vlgmr.msra.gmra.mxu2 %v4098_v18 }
 0x372   : > { %v1283_v23 = vpop.f32.mrf.mxu1  ;;  %v1263_v24 = vpop.f32.mrf.mxu0 }
 0x373   : > { %v1284_v25 = vadd.f32 %v1283_v23, %v1241_v21  ;;  %v1264_v26 = vadd.f32 %v1263_v24, %v1240_v22 }
 0x375   : > { %v4105_v27 = vmul.f32 0.25, %v1264_v26  ;;  %1437 = vrot.lane.b32.xlu2 %v1284_v25, %s3540_s0  ;;  %1371 = vrot.lane.b32.xlu0 %v1284_v25, %s3541_s27 }
 0x376   : > { %2630 = vmatpush.xpose.msk.msrb.mxu0 %vm1307_vm5, %v1284_v25 }
 0x379   : > { %2631 = vmatmul.msk.f32.vlgmr.msrb.gmra.mxu0 %vm1307_vm5, %v4105_v27 }
 0x37a   : > { %v1303_v29 = vpop.f32.mrf.mxu2 }
 0x37b   : > { %v4112_v30 = vadd.f32 %v1303_v29, %v1242_v28 }
 0x37d   : > { %1409 = vrot.lane.b32.xlu2 %v4112_v30, %s3541_s27  ;;  %1369 = vrot.lane.b32.xlu0 %v4105_v27, %s3541_s27 }
 0x37e   : > { %1364 = vmatpush.msrb.mxu2 %v4112_v30 }
 0x385   : > { %1500 = vrot.lane.b32.xlu2 %v4105_v27, %s3542_s14  ;;  %1502 = vrot.lane.b32.xlu0 %v1284_v25, %s3542_s14 }
 0x38d   : > { %1632 = vrot.lane.b32.xlu2 %v1284_v25, %s3543_s16  ;;  %1567 = vrot.lane.b32.xlu0 %v1284_v25, %s3544_s29 }
 0x395   : > { %1630 = vrot.lane.b32.xlu2 %v4105_v27, %s3543_s16  ;;  %1565 = vrot.lane.b32.xlu0 %v4105_v27, %s3544_s29 }
 0x39d   : > { %1762 = vrot.lane.b32.xlu2 %v1284_v25, %s3545_s3  ;;  %1697 = vrot.lane.b32.xlu0 %v1284_v25, %s3546_s24 }
 0x3a5   : > { %1760 = vrot.lane.b32.xlu0 %v4105_v27, %s3545_s3 }
 0x3cf   : > { %v1438_v31 = vpop.permute.xlu2 %1437 }
 0x3d7   : > { %v1410_v32 = vpop.permute.xlu2 %1409 }
 0x3d8   : > { %1430 = vmatpush.msra.mxu3 %v1410_v32 }
 0x3da   : > { %2636 = vmatpush.xpose.msk.msrb.mxu3 %vm1307_vm5, %v1438_v31 }
 0x3df   : > { %v1501_v33 = vpop.permute.xlu2 %1500 }
 0x3e7   : > { %v1372_v34 = vpop.permute.xlu0 %1371  ;;  %v1633_v35 = vpop.permute.xlu2 %1632 }
 0x3e8   : > { %2633 = vmatpush.xpose.msk.msrb.mxu1 %vm1307_vm5, %v1372_v34 }
 0x3ef   : > { %v1370_v36 = vpop.permute.xlu0 %1369  ;;  %v1631_v37 = vpop.permute.xlu2 %1630 }
 0x3f0   : > { %2634 = vmatmul.msk.f32.vlgmr.msrb.gmra.mxu1 %vm1307_vm5, %v1370_v36 }
 0x3f6   : > { %v1331_v38 = vpop.f32.mrf.mxu0 }
 0x3f7   : > { %v1503_v39 = vpop.permute.xlu0 %1502  ;;  %v1335_v40 = vsel %vm1334_vm6, %v1331_v38, -inf  ;;  %v1763_v41 = vpop.permute.xlu2 %1762 }
 0x3f8   : > { %1336 = vmax.xlane.f32.xlu2 %v1335_v40  ;;  %2639 = vmatpush.xpose.msk.msra.mxu1 %vm1307_vm5, %v1503_v39 }
 0x3fb   : > { %2640 = vmatmul.msk.f32.vlgmr.msra.gmra.mxu1 %vm1307_vm5, %v1501_v33 }
 0x3fc   : > { %2645 = vmatpush.xpose.msk.msrb.mxu1 %vm1307_vm5, %v1633_v35 }
 0x3ff   : > { %v1568_v42 = vpop.permute.xlu0 %1567 }
 0x400   : > { %2651 = vmatpush.xpose.msk.msra.mxu1 %vm1307_vm5, %v1763_v41 }
 0x403   : > { %2646 = vmatmul.msk.f32.vlgmr.msrb.gmra.mxu1 %vm1307_vm5, %v1631_v37 }
 0x407   : > { %v1566_v43 = vpop.permute.xlu0 %1565 }
 0x40f   : > { %v1698_v44 = vpop.permute.xlu0 %1697 }
 0x417   : > { %v1761_v45 = vpop.permute.xlu0 %1760 }
 0x418   : > { %2652 = vmatmul.msk.f32.vlgmr.msra.gmra.mxu1 %vm1307_vm5, %v1761_v45 }
 0x46b   : > { %v1337_v58 = vpop.xlane.xlu2 %1336 }
 0x46c   : > { %v1338_v59 = vsub.f32 %v1331_v38, %v1337_v58 }
 0x46d   : > { %v1394_v46 = vpop.f32.mrf.mxu1 }
 0x46e   : > { %v1397_v47 = vsel %vm1334_vm6, %v1394_v46, -inf  ;;  %v1339_v60 = vmul.f32 1.442695, %v1338_v59 }
 0x46f   : > { %1398 = vmax.xlane.f32.xlu1 %v1397_v47 }
 0x478   : > { %v1525_v48 = vpop.f32.mrf.mxu1 }
 0x479   : > { %v1528_v61 = vsel %vm1334_vm6, %v1525_v48, -inf }
 0x480   : > { %v1655_v49 = vpop.f32.mrf.mxu1 }
 0x481   : > { %v1658_v50 = vsel %vm1334_vm6, %v1655_v49, -inf }
 0x482   : > { %1659 = vmax.xlane.f32.xlu2 %v1658_v50 }
 0x488   : > { %1435 = vrot.lane.b32.xlu1 %v4105_v27, %s3540_s0 }
 0x495   : > { %v1785_v51 = vpop.f32.mrf.mxu1 }
 0x496   : > { %v1788_v52 = vsel %vm1334_vm6, %v1785_v51, -inf }
 0x497   : > { %1789 = vmax.xlane.f32.xlu2 %v1788_v52 }
 0x4e2   : > { %v1399_v53 = vpop.xlane.xlu1 %1398 }
 0x4e3   : > { %v1400_v54 = vsub.f32 %v1394_v46, %v1399_v53 }
 0x4e5   : > { %v1401_v55 = vmul.f32 1.442695, %v1400_v54 }
 0x4e7   : > { %2834 = vpow2.f32 %v1401_v55 }
 0x4e8   : > { %2836 = vpow2.f32 %v1339_v60 }
 0x4ed   : > { %v2835_v56 = vpop.eup %2834 }
 0x4ee   : > { %v1403_v57 = vsel %vm1334_vm6, %v2835_v56, 0.0  ;;  %v2837_v62 = vpop.eup %2836 }
 0x4ef   : > { %1404 = vadd.xlane.f32.xlu1 %v1403_v57  ;;  %v1341_v63 = vsel %vm1334_vm6, %v2837_v62, 0.0 }
 0x4f5   : > { %v1660_v13 = vpop.xlane.xlu2 %1659 }
 0x4f6   : > { %v1661_v19 = vsub.f32 %v1655_v49, %v1660_v13  ;;  %v1878_v13 = vld [vmem:[%s4005_s7 + $0x60] sm:$0xff] }
 0x4f8   : > { %v1662_v22 = vmul.f32 1.442695, %v1661_v19  ;;  %v1876_v19 = vld [vmem:[%s4005_s7 + $0x50] sm:$0xff] }
 0x4fa   : > { %v1436_v0 = vpop.permute.xlu1 %1435 }
 0x508   : > { %1695 = vrot.lane.b32.xlu1 %v4105_v27, %s3546_s24 }
 0x50a   : > { %v1790_v14 = vpop.xlane.xlu2 %1789 }
 0x50b   : > { %v1791_v15 = vsub.f32 %v1785_v51, %v1790_v14  ;;  %v1877_v14 = vld [vmem:[%s4005_s7 + $0x58] sm:$0xff] }
 0x50d   : > { %v1792_v17 = vmul.f32 1.442695, %v1791_v15 }
 0x532   : > { %1529 = vmax.xlane.f32.xlu1 %v1528_v61 }
 0x53a   : > { %1342 = vadd.xlane.f32.xlu1 %v1341_v63 }
 0x562   : > { %v1405_v1 = vpop.xlane.xlu1 %1404 }
 0x563   : > { %2838 = vrcp.f32 %v1405_v1 }
 0x569   : > { %v2839_v2 = vpop.eup %2838 }
 0x56a   : > { %v1407_v3 = vmul.f32 %v2839_v2, %v2835_v56 }
 0x56c   : > { %2635 = vmatmul.msk.f32.vlgmr.msra.gmra.mxu3 %vm1334_vm6, %v1407_v3 }
 0x56d   : > { %2642 = vmatpush.xpose.msk.msra.mxu3 %vm1307_vm5, %v1568_v42 }
 0x574   : > { %2637 = vmatmul.msk.f32.vlgmr.msrb.gmra.mxu3 %vm1307_vm5, %v1436_v0 }
 0x575   : > { %2648 = vmatpush.xpose.msk.msrb.mxu3 %vm1307_vm5, %v1698_v44 }
 0x57a   : > { %v1696_v4 = vpop.permute.xlu1 %1695 }
 0x57c   : > { %2643 = vmatmul.msk.f32.vlgmr.msra.gmra.mxu3 %vm1307_vm5, %v1566_v43 }
 0x584   : > { %2649 = vmatmul.msk.f32.vlgmr.msrb.gmra.mxu3 %vm1307_vm5, %v1696_v4 }
 0x5a5   : > { %v1530_v5 = vpop.xlane.xlu1 %1529 }
 0x5a6   : > { %v1531_v6 = vsub.f32 %v1525_v48, %v1530_v5 }
 0x5a8   : > { %v1532_v7 = vmul.f32 1.442695, %v1531_v6 }
 0x5aa   : > { %2840 = vpow2.f32 %v1532_v7 }
 0x5ad   : > { %v1343_v8 = vpop.xlane.xlu1 %1342 }
 0x5ae   : > { %2842 = vrcp.f32 %v1343_v8 }
 0x5af   : > { %2844 = vpow2.f32 %v1792_v17 }
 0x5b0   : > { %v2841_v9 = vpop.eup %2840  ;;  %2846 = vpow2.f32 %v1662_v22  ;;  %v1873_v22 = vld [vmem:[%s4005_s7 + $0x38] sm:$0xff] }
 0x5b1   : > { %v1534_v10 = vsel %vm1334_vm6, %v2841_v9, 0.0 }
 0x5b2   : > { %1535 = vadd.xlane.f32.xlu2 %v1534_v10  ;;  %v1881_v10 = vld [vmem:[%s4005_s7 + $0x78] sm:$0xff] }
 0x5b3   : > { %1886 = vmatpush.msra.mxu3 %v1881_v10  ;;  %v1958_v10 = vld [vmem:[%s4014_s21 + $0x70] sm:$0xff] }
 0x5b4   : > { %v2843_v11 = vpop.eup %2842 }
 0x5b5   : > { %v1345_v12 = vmul.f32 %v2843_v11, %v2837_v62  ;;  %v2845_v23 = vpop.eup %2844  ;;  %v1880_v11 = vld [vmem:[%s4005_s7 + $0x70] sm:$0xff] }
 0x5b6   : > { %v1794_v26 = vsel %vm1334_vm6, %v2845_v23, 0.0  ;;  %v2847_v27 = vpop.eup %2846  ;;  %1887 = vmatpush.msra.mxu3 %v1880_v11  ;;  %v1959_v11 = vld [vmem:[%s4014_s21 + $0x78] sm:$0xff] }
 0x5b7   : > { %2632 = vmatmul.msk.f32.vlgmr.msrb.gmra.mxu2 %vm1334_vm6, %v1345_v12  ;;  %v1664_v29 = vsel %vm1334_vm6, %v2847_v27, 0.0  ;;  %v1879_v12 = vld [vmem:[%s4005_s7 + $0x68] sm:$0xff] }
 0x5b8   : > { %1888 = vmatpush.msra.mxu3 %v1879_v12  ;;  %v1956_v12 = vld [vmem:[%s4014_s21 + $0x60] sm:$0xff] }
 0x5ba   : > { %1889 = vmatpush.msra.mxu3 %v1878_v13  ;;  %v1957_v13 = vld [vmem:[%s4014_s21 + $0x68] sm:$0xff] }
 0x5bc   : > { %1890 = vmatpush.msra.mxu3 %v1877_v14  ;;  %v1954_v14 = vld [vmem:[%s4014_s21 + $0x50] sm:$0xff] }
 0x5be   : > { %1891 = vmatpush.msra.mxu3 %v1876_v19  ;;  %v1950_v19 = vld [vmem:[%s4014_s21 + $0x30] sm:$0xff] }
 0x5ca   : > { %1539 = vrot.lane.b32.xlu2 %v4112_v30, %s3542_s14 }
 0x5ef   : > { %v1432_v16 = vpop.f32.mrf.mxu3 }
 0x5f7   : > { %v1460_v20 = vpop.f32.mrf.mxu3 }
 0x5f8   : > { %v1463_v21 = vsel %vm1334_vm6, %v1460_v20, -inf }
 0x5f9   : > { %1464 = vmax.xlane.f32.xlu0 %v1463_v21  ;;  %v1874_v21 = vld [vmem:[%s4005_s7 + $0x40] sm:$0xff] }
 0x5ff   : > { %v1590_v24 = vpop.f32.mrf.mxu3 }
 0x600   : > { %v1593_v25 = vsel %vm1334_vm6, %v1590_v24, -inf }
 0x601   : > { %1594 = vmax.xlane.f32.xlu1 %v1593_v25  ;;  %1795 = vadd.xlane.f32.xlu0 %v1794_v26  ;;  %v1870_v25 = vld [vmem:[%s4005_s7 + $0x20] sm:$0xff]  ;;  %v1869_v26 = vld [vmem:[%s4005_s7 + $0x18] sm:$0xff] }
 0x607   : > { %v1720_v28 = vpop.f32.mrf.mxu3 }
 0x608   : > { %v1723_v31 = vsel %vm1334_vm6, %v1720_v28, -inf }
 0x609   : > { %1665 = vadd.xlane.f32.xlu1 %v1664_v29  ;;  %1724 = vmax.xlane.f32.xlu0 %v1723_v31  ;;  %v1866_v29 = vld [vmem:[%s4005_s7] sm:$0xff] }
 0x61d   : > { %1669 = vrot.lane.b32.xlu0 %v4112_v30, %s3543_s16 }
 0x622   : > { %1474 = vrot.lane.b32.xlu1 %v4112_v30, %s3540_s0 }
 0x625   : > { %v1536_v32 = vpop.xlane.xlu2 %1535 }
 0x626   : > { %2848 = vrcp.f32 %v1536_v32 }
 0x62a   : > { %1604 = vrot.lane.b32.xlu1 %v4112_v30, %s3544_s29 }
 0x62c   : > { %v2849_v33 = vpop.eup %2848 }
 0x62d   : > { %v1538_v34 = vmul.f32 %v2849_v33, %v2841_v9  ;;  %v1540_v35 = vpop.permute.xlu2 %1539 }
 0x62e   : > { %1560 = vmatpush.msra.mxu2 %v1540_v35 }
 0x62f   : > { %2641 = vmatmul.msk.f32.vlgmr.msra.gmra.mxu2 %vm1334_vm6, %v1538_v34 }
 0x632   : > { %1799 = vrot.lane.b32.xlu1 %v4112_v30, %s3545_s3 }
 0x63a   : > { %1826 = vrot.lane.b32.xlu1 %v1432_v16, %s3545_s3  ;;  %v4184_v61 = vpop.f32.mrf.mxu2 }
 0x66c   : > { %v1465_v36 = vpop.xlane.xlu0 %1464 }
 0x66d   : > { %v1466_v37 = vsub.f32 %v1460_v20, %v1465_v36  ;;  %v1875_v20 = vld [vmem:[%s4005_s7 + $0x48] sm:$0xff] }
 0x66e   : > { %1892 = vmatpush.msra.mxu3 %v1875_v20  ;;  %v1951_v20 = vld [vmem:[%s4014_s21 + $0x38] sm:$0xff] }
 0x66f   : > { %v1467_v38 = vmul.f32 1.442695, %v1466_v37 }
 0x670   : > { %1893 = vmatpush.msra.mxu3 %v1874_v21  ;;  %v1948_v21 = vld [vmem:[%s4014_s21 + $0x20] sm:$0xff] }
 0x671   : > { %2850 = vpow2.f32 %v1467_v38 }
 0x672   : > { %1894 = vmatpush.msra.mxu3 %v1873_v22  ;;  %v1949_v22 = vld [vmem:[%s4014_s21 + $0x28] sm:$0xff] }
 0x674   : > { %v1595_v39 = vpop.xlane.xlu1 %1594  ;;  %v1796_v40 = vpop.xlane.xlu0 %1795 }
 0x675   : > { %v1596_v41 = vsub.f32 %v1590_v24, %v1595_v39  ;;  %v1871_v24 = vld [vmem:[%s4005_s7 + $0x28] sm:$0xff] }
 0x677   : > { %v2851_v42 = vpop.eup %2850  ;;  %v1597_v43 = vmul.f32 1.442695, %v1596_v41 }
 0x678   : > { %v1469_v44 = vsel %vm1334_vm6, %v2851_v42, 0.0 }
 0x679   : > { %2852 = vpow2.f32 %v1597_v43  ;;  %1470 = vadd.xlane.f32.xlu0 %v1469_v44 }
 0x67c   : > { %v1725_v45 = vpop.xlane.xlu0 %1724  ;;  %v1666_v50 = vpop.xlane.xlu1 %1665 }
 0x67d   : > { %v1726_v46 = vsub.f32 %v1720_v28, %v1725_v45  ;;  %v1867_v28 = vld [vmem:[%s4005_s7 + $0x8] sm:$0xff]  ;;  %v2828_v45 = vld [vmem:[%s928_s30] ss:$0 sm:$0xff] }
 0x67f   : > { %v2853_v47 = vpop.eup %2852  ;;  %v1727_v48 = vmul.f32 1.442695, %v1726_v46 }
 0x680   : > { %v1599_v49 = vsel %vm1334_vm6, %v2853_v47, 0.0 }
 0x681   : > { %2854 = vpow2.f32 %v1727_v48  ;;  %1600 = vadd.xlane.f32.xlu0 %v1599_v49  ;;  %v3547_v49 = vmov 128.0  }
 0x682   : > { %2856 = vrcp.f32 %v1666_v50  ;;  %v1974_v50 = vld [vmem:[%s4014_s21 + $0xf0] sm:$0xff] }
 0x683   : > { %2858 = vrcp.f32 %v1796_v40 }
 0x687   : > { %v2855_v51 = vpop.eup %2854 }
 0x688   : > { %v1729_v52 = vsel %vm1334_vm6, %v2855_v51, 0.0  ;;  %v2857_v53 = vpop.eup %2856 }
 0x689   : > { %1730 = vadd.xlane.f32.xlu2 %v1729_v52  ;;  %v1668_v54 = vmul.f32 %v2857_v53, %v2847_v27  ;;  %v2859_v58 = vpop.eup %2858  ;;  %v1868_v27 = vld [vmem:[%s4005_s7 + $0x10] sm:$0xff]  ;;  %v1972_v52 = vld [vmem:[%s4014_s21 + $0xe0] sm:$0xff] }
 0x68a   : > { %v1798_v59 = vmul.f32 %v2859_v58, %v2845_v23  ;;  %v1872_v23 = vld [vmem:[%s4005_s7 + $0x30] sm:$0xff]  ;;  %s4411_s7 = sld [smem:[#allocation46_spill]] }
 0x68b   : > { %1895 = vmatpush.msra.mxu3 %v1872_v23  ;;  %v1973_v53 = vld [vmem:[%s4014_s21 + $0xe8] sm:$0xff]  ;;  %v1946_v23 = vld [vmem:[%s4014_s21 + $0x10] sm:$0xff] }
 0x68d   : > { %1896 = vmatpush.msra.mxu3 %v1871_v24  ;;  %v1947_v24 = vld [vmem:[%s4014_s21 + $0x18] sm:$0xff] }
 0x68f   : > { %v1670_v55 = vpop.permute.xlu0 %1669  ;;  %1897 = vmatpush.msra.mxu3 %v1870_v25  ;;  %v1944_v25 = vld [vmem:[%s4014_s21] sm:$0xff] }
 0x690   : > { %1690 = vmatpush.msrb.mxu2 %v1670_v55  ;;  %p2654_p4 = scmp.ne.s32.totalorder %s4411_s7, 5 }
 0x691   : > { %2647 = vmatmul.msk.f32.vlgmr.msrb.gmra.mxu2 %vm1334_vm6, %v1668_v54  ;;  %1898 = vmatpush.msra.mxu3 %v1869_v26  ;;  %v1945_v26 = vld [vmem:[%s4014_s21 + $0x8] sm:$0xff] }
 0x693   : > { %1899 = vmatpush.msra.mxu3 %v1868_v27  ;;  %v2039_v27 = vld [vmem:[%s4024_s5 + $0x78] sm:$0xff] }
 0x694   : > { %v1475_v56 = vpop.permute.xlu1 %1474 }
 0x695   : > { %1495 = vmatpush.msra.mxu0 %v1475_v56  ;;  %1734 = vrot.lane.b32.xlu0 %v4112_v30, %s3546_s24 }
 0x696   : > { %1900 = vmatpush.msra.mxu3 %v1867_v28  ;;  %v2055_v28 = vld [vmem:[%s4024_s5 + $0xf8] sm:$0xff] }
 0x698   : > { %1901 = vmatpush.msra.mxu3 %v1866_v29  ;;  %v2038_v29 = vld [vmem:[%s4024_s5 + $0x70] sm:$0xff] }
 0x69a   : > { %2080 = vmatpush.msrb.mxu3 %v2055_v28 }
 0x69c   : > { %v1605_v57 = vpop.permute.xlu1 %1604 }
 0x69d   : > { %1625 = vmatpush.msrb.mxu0 %v1605_v57 }
 0x6a4   : > { %v1800_v60 = vpop.permute.xlu1 %1799 }
 0x6a5   : > { %1820 = vmatpush.msra.mxu2 %v1800_v60 }
 0x6a6   : > { %2653 = vmatmul.msk.f32.vlgmr.msra.gmra.mxu2 %vm1334_vm6, %v1798_v59 }
 0x6a7   : > { %2060 = vmatpush.msrb.mxu2 %v2039_v27 }
 0x6a9   : > { %2061 = vmatpush.msrb.mxu2 %v2038_v29 }
 0x6ac   : > { %v1827_v32 = vpop.permute.xlu1 %1826 }
 0x6ad   : > { %v1853_v34 = vsel %vm1307_vm5, %v4184_v61, %v1827_v32  ;;  %v2037_v32 = vld [vmem:[%s4024_s5 + $0x68] sm:$0xff] }
 0x6ae   : > { %2062 = vmatpush.msrb.mxu2 %v2037_v32 }
 0x6b2   : > { %v1562_v62 = vpop.f32.mrf.mxu2 }
 0x6b3   : > { %1834 = vrot.lane.b32.xlu1 %v1562_v62, %s3543_s16 }
 0x6ec   : > { %v1471_v63 = vpop.xlane.xlu0 %1470 }
 0x6ed   : > { %2860 = vrcp.f32 %v1471_v63  ;;  %v1970_v63 = vld [vmem:[%s4014_s21 + $0xd0] sm:$0xff] }
 0x6f3   : > { %v2861_v0 = vpop.eup %2860 }
 0x6f4   : > { %v1473_v1 = vmul.f32 %v2861_v0, %v2851_v42  ;;  %v1601_v2 = vpop.xlane.xlu0 %1600  ;;  %v1971_v0 = vld [vmem:[%s4014_s21 + $0xd8] sm:$0xff] }
 0x6f5   : > { %2862 = vrcp.f32 %v1601_v2  ;;  %v1969_v2 = vld [vmem:[%s4014_s21 + $0xc8] sm:$0xff] }
 0x6f6   : > { %2638 = vmatmul.msk.f32.vlgmr.msra.gmra.mxu0 %vm1334_vm6, %v1473_v1  ;;  %v1968_v1 = vld [vmem:[%s4014_s21 + $0xc0] sm:$0xff] }
 0x6fb   : > { %v2863_v30 = vpop.eup %2862 }
 0x6fc   : > { %v1603_v3 = vmul.f32 %v2863_v30, %v2853_v47  ;;  %v1731_v4 = vpop.xlane.xlu2 %1730  ;;  %v1966_v30 = vld [vmem:[%s4014_s21 + $0xb0] sm:$0xff] }
 0x6fd   : > { %2864 = vrcp.f32 %v1731_v4  ;;  %v1964_v4 = vld [vmem:[%s4014_s21 + $0xa0] sm:$0xff] }
 0x6fe   : > { %2644 = vmatmul.msk.f32.vlgmr.msrb.gmra.mxu0 %vm1334_vm6, %v1603_v3  ;;  %2866 = vrcp.f32 %v3547_v49  ;;  %v1967_v3 = vld [vmem:[%s4014_s21 + $0xb8] sm:$0xff] }
 0x6ff   : > { %v2047_v49 = vld [vmem:[%s4024_s5 + $0xb8] sm:$0xff] }
 0x703   : > { %v2865_v5 = vpop.eup %2864 }
 0x704   : > { %v1733_v6 = vmul.f32 %v2865_v5, %v2855_v51  ;;  %v1975_v51 = vld [vmem:[%s4014_s21 + $0xf8] sm:$0xff]  ;;  %v2867_v54 = vpop.eup %2866  ;;  %v1965_v5 = vld [vmem:[%s4014_s21 + $0xa8] sm:$0xff] }
 0x705   : > { %2002 = vmatpush.msrb.mxu1 %v1975_v51  ;;  %v1912_v55 = vmul.f32 128.0, %v2867_v54  ;;  %vm1916_vm13 = vweird.f32 %v2867_v54  ;;  %v2030_v51 = vld [vmem:[%s4024_s5 + $0x30] sm:$0xff] }
 0x707   : > { %v1735_v7 = vpop.permute.xlu0 %1734  ;;  %2003 = vmatpush.msrb.mxu1 %v1973_v53  ;;  %v1913_v56 = vsub.f32 1.0, %v1912_v55  ;;  %v2045_v55 = vld [vmem:[%s4024_s5 + $0xa8] sm:$0xff] }
 0x708   : > { %1755 = vmatpush.msra.mxu0 %v1735_v7  ;;  %v1963_v7 = vld [vmem:[%s4014_s21 + $0x98] sm:$0xff] }
 0x709   : > { %2650 = vmatmul.msk.f32.vlgmr.msra.gmra.mxu0 %vm1334_vm6, %v1733_v6  ;;  %v1914_v57 = vmul.f32 %v2867_v54, %v1913_v56  ;;  %2004 = vmatpush.msrb.mxu1 %v1971_v0  ;;  %v1962_v6 = vld [vmem:[%s4014_s21 + $0x90] sm:$0xff]  ;;  %v2829_v0 = vld [vmem:[%s976_s19] ss:$0 sm:$0xff] }
 0x70a   : > { %1982 = vmatpush.msrb.mxu0 %v1974_v50 }
 0x70b   : > { %2005 = vmatpush.msrb.mxu1 %v1969_v2 }
 0x70c   : > { %1983 = vmatpush.msrb.mxu0 %v1972_v52  ;;  %v2046_v52 = vld [vmem:[%s4024_s5 + $0xb0] sm:$0xff] }
 0x70d   : > { %2006 = vmatpush.msrb.mxu1 %v1967_v3 }
 0x70e   : > { %1984 = vmatpush.msrb.mxu0 %v1970_v63 }
 0x70f   : > { %2007 = vmatpush.msrb.mxu1 %v1965_v5  ;;  %v2026_v5 = vld [vmem:[%s4024_s5 + $0x10] sm:$0xff] }
 0x710   : > { %1985 = vmatpush.msrb.mxu0 %v1968_v1 }
 0x711   : > { %2008 = vmatpush.msrb.mxu1 %v1963_v7  ;;  %v2025_v7 = vld [vmem:[%s4024_s5 + $0x8] sm:$0xff] }
 0x712   : > { %1986 = vmatpush.msrb.mxu0 %v1966_v30  ;;  %v2830_v30 = vld [vmem:[%s985_s1] ss:$0 sm:$0xff] }
 0x714   : > { %v1692_v8 = vpop.f32.mrf.mxu2  ;;  %1987 = vmatpush.msrb.mxu0 %v1964_v4 }
 0x715   : > { %1842 = vrot.lane.b32.xlu1 %v1692_v8, %s3542_s14  ;;  %v1960_v8 = vld [vmem:[%s4014_s21 + $0x80] sm:$0xff] }
 0x716   : > { %1988 = vmatpush.msrb.mxu0 %v1962_v6  ;;  %v2042_v6 = vld [vmem:[%s4024_s5 + $0x90] sm:$0xff] }
 0x718   : > { %1989 = vmatpush.msrb.mxu0 %v1960_v8  ;;  %v2041_v8 = vld [vmem:[%s4024_s5 + $0x88] sm:$0xff] }
 0x71a   : > { %1990 = vmatpush.msrb.mxu0 %v1958_v10  ;;  %v2040_v10 = vld [vmem:[%s4024_s5 + $0x80] sm:$0xff] }
 0x71c   : > { %1991 = vmatpush.msrb.mxu0 %v1956_v12 }
 0x71e   : > { %1992 = vmatpush.msrb.mxu0 %v1954_v14 }
 0x725   : > { %v1835_v33 = vpop.permute.xlu1 %1834 }
 0x729   : > { %v1822_v9 = vpop.f32.mrf.mxu2 }
 0x72a   : > { %1850 = vrot.lane.b32.xlu2 %v1822_v9, %s3541_s27  ;;  %v1961_v9 = vld [vmem:[%s4014_s21 + $0x88] sm:$0xff] }
 0x72b   : > { %2009 = vmatpush.msrb.mxu1 %v1961_v9  ;;  %v2024_v9 = vld [vmem:[%s4024_s5] sm:$0xff] }
 0x72d   : > { %2010 = vmatpush.msrb.mxu1 %v1959_v11 }
 0x72f   : > { %2011 = vmatpush.msrb.mxu1 %v1957_v13 }
 0x773   : > { %v1497_v15 = vpop.f32.mrf.mxu0 }
 0x774   : > { %1830 = vrot.lane.b32.xlu0 %v1497_v15, %s3546_s24  ;;  %v1955_v15 = vld [vmem:[%s4014_s21 + $0x58] sm:$0xff] }
 0x775   : > { %2012 = vmatpush.msrb.mxu1 %v1955_v15 }
 0x77b   : > { %v1627_v16 = vpop.f32.mrf.mxu0 }
 0x77c   : > { %1838 = vrot.lane.b32.xlu0 %v1627_v16, %s3544_s29  ;;  %v1952_v16 = vld [vmem:[%s4014_s21 + $0x40] sm:$0xff] }
 0x77d   : > { %1993 = vmatpush.msrb.mxu0 %v1952_v16 }
 0x77f   : > { %1994 = vmatpush.msrb.mxu0 %v1950_v19 }
 0x781   : > { %1995 = vmatpush.msrb.mxu0 %v1948_v21 }
 0x783   : > { %1996 = vmatpush.msrb.mxu0 %v1946_v23 }
 0x784   : > { %v1851_v42 = vpop.permute.xlu2 %1850 }
 0x785   : > { %1997 = vmatpush.msrb.mxu0 %v1944_v25 }
 0x786   : > { %v1757_v17 = vpop.f32.mrf.mxu0 }
 0x787   : > { %1846 = vrot.lane.b32.xlu0 %v1757_v17, %s3540_s0  ;;  %v1843_v39 = vpop.permute.xlu1 %1842  ;;  %v1953_v17 = vld [vmem:[%s4014_s21 + $0x48] sm:$0xff] }
 0x788   : > { %2013 = vmatpush.msrb.mxu1 %v1953_v17 }
 0x78a   : > { %2014 = vmatpush.msrb.mxu1 %v1951_v20  ;;  %v2831_v20 = vld [vmem:[%s967_s4] ss:$0 sm:$0xff] }
 0x78c   : > { %2015 = vmatpush.msrb.mxu1 %v1949_v22 }
 0x78e   : > { %2016 = vmatpush.msrb.mxu1 %v1947_v24 }
 0x790   : > { %2017 = vmatpush.msrb.mxu1 %v1945_v26 }
 0x7e6   : > { %v1831_v31 = vpop.permute.xlu0 %1830 }
 0x7e7   : > { %v1855_v36 = vsel %vm1854_vm7, %v1853_v34, %v1831_v31  ;;  %v2054_v31 = vld [vmem:[%s4024_s5 + $0xf0] sm:$0xff] }
 0x7e8   : > { %v1857_v37 = vsel %vm1856_vm8, %v1855_v36, %v1835_v33  ;;  %v2053_v33 = vld [vmem:[%s4024_s5 + $0xe8] sm:$0xff]  ;;  %2081 = vmatpush.msrb.mxu3 %v2054_v31  ;;  %v2036_v36 = vld [vmem:[%s4024_s5 + $0x60] sm:$0xff] }
 0x7e9   : > { %2063 = vmatpush.msrb.mxu2 %v2036_v36 }
 0x7ea   : > { %2082 = vmatpush.msrb.mxu3 %v2053_v33 }
 0x7ee   : > { %v1839_v35 = vpop.permute.xlu0 %1838 }
 0x7ef   : > { %v1859_v38 = vsel %vm1858_vm9, %v1857_v37, %v1839_v35  ;;  %v2052_v37 = vld [vmem:[%s4024_s5 + $0xe0] sm:$0xff] }
 0x7f0   : > { %v1861_v40 = vsel %vm1860_vm10, %v1859_v38, %v1843_v39  ;;  %v2035_v39 = vld [vmem:[%s4024_s5 + $0x58] sm:$0xff]  ;;  %2083 = vmatpush.msrb.mxu3 %v2052_v37 }
 0x7f1   : > { %2064 = vmatpush.msrb.mxu2 %v2035_v39 }
 0x7f9   : > { %v1847_v41 = vpop.permute.xlu0 %1846 }
 0x7fa   : > { %v1863_v43 = vsel %vm1862_vm11, %v1861_v40, %v1847_v41  ;;  %v2051_v40 = vld [vmem:[%s4024_s5 + $0xd8] sm:$0xff]  ;;  %v2034_v41 = vld [vmem:[%s4024_s5 + $0x50] sm:$0xff] }
 0x7fb   : > { %v1865_v44 = vsel %vm1864_vm12, %v1863_v43, %v1851_v42  ;;  %v2050_v42 = vld [vmem:[%s4024_s5 + $0xd0] sm:$0xff]  ;;  %2084 = vmatpush.msrb.mxu3 %v2051_v40  ;;  %v2033_v43 = vld [vmem:[%s4024_s5 + $0x48] sm:$0xff]  ;;  %2065 = vmatpush.msrb.mxu2 %v2034_v41  ;;  %v2832_v40 = vld [vmem:[%s994_s28] ss:$0 sm:$0xff] }
 0x7fc   : > { %1902 = vmatmul.f32.vlgmr.msra.gmra.mxu3 %v1865_v44  ;;  %v2049_v44 = vld [vmem:[%s4024_s5 + $0xc8] sm:$0xff] }
 0x7fd   : > { %2085 = vmatpush.msrb.mxu3 %v2050_v42  ;;  %2066 = vmatpush.msrb.mxu2 %v2033_v43  ;;  %v2833_v42 = vld [vmem:[%s1003_s12] ss:$0 sm:$0xff] }
 0x7ff   : > { %2086 = vmatpush.msrb.mxu3 %v2049_v44 }
 0x87f   : > { %v1903_v46 = vpop.f32.mrf.mxu3 }
 0x880   : > { %v1904_v47 = vadd.f32 %v2828_v45, %v1903_v46  ;;  %v2032_v45 = vld [vmem:[%s4024_s5 + $0x40] sm:$0xff] }
 0x881   : > { %v2048_v46 = vld [vmem:[%s4024_s5 + $0xc0] sm:$0xff]  ;;  %2067 = vmatpush.msrb.mxu2 %v2032_v45 }
 0x882   : > { %v1906_v48 = vadd.f32 %v1904_v47, %v4098_v18  ;;  %v1915_v18 = vadd.f32 %v2867_v54, %v1914_v57  ;;  %2087 = vmatpush.msrb.mxu3 %v2048_v46  ;;  %v2028_v57 = vld [vmem:[%s4024_s5 + $0x20] sm:$0xff] }
 0x884   : > { %1909 = vadd.xlane.f32.xlu1 %v1906_v48  ;;  %v4220_v58 = vsel %vm1916_vm13, %v2867_v54, %v1915_v18  ;;  %2088 = vmatpush.msrb.mxu3 %v2047_v49  ;;  %v2029_v54 = vld [vmem:[%s4024_s5 + $0x28] sm:$0xff]  ;;  %v2044_v18 = vld [vmem:[%s4024_s5 + $0xa0] sm:$0xff] }
 0x886   : > { %2089 = vmatpush.msrb.mxu3 %v2046_v52 }
 0x888   : > { %2090 = vmatpush.msrb.mxu3 %v2045_v55 }
 0x88a   : > { %2091 = vmatpush.msrb.mxu3 %v2044_v18 }
 0x8f7   : > { %v1910_v59 = vpop.xlane.xlu1 %1909 }
 0x8f8   : > { %v1918_v60 = vmul.f32 %v4220_v58, %v1910_v59 }
 0x8fa   : > { %v4223_v61 = vsub.f32 %v1906_v48, %v1918_v60  ;;  %v2031_v48 = vld [vmem:[%s4024_s5 + $0x38] sm:$0xff] }
 0x8fb   : > { %2068 = vmatpush.msrb.mxu2 %v2031_v48  ;;  %v2027_v60 = vld [vmem:[%s4024_s5 + $0x18] sm:$0xff] }
 0x8fc   : > { %v1920_v62 = vmul.f32 %v4223_v61, %v4223_v61 }
 0x8fd   : > { %2069 = vmatpush.msrb.mxu2 %v2030_v51 }
 0x8fe   : > { %1921 = vadd.xlane.f32.xlu0 %v1920_v62  ;;  %v2043_v62 = vld [vmem:[%s4024_s5 + $0x98] sm:$0xff] }
 0x8ff   : > { %2070 = vmatpush.msrb.mxu2 %v2029_v54  ;;  %2092 = vmatpush.msrb.mxu3 %v2043_v62 }
 0x901   : > { %2071 = vmatpush.msrb.mxu2 %v2028_v57  ;;  %2093 = vmatpush.msrb.mxu3 %v2042_v6 }
 0x903   : > { %2072 = vmatpush.msrb.mxu2 %v2027_v60  ;;  %2094 = vmatpush.msrb.mxu3 %v2041_v8 }
 0x905   : > { %2073 = vmatpush.msrb.mxu2 %v2026_v5  ;;  %2095 = vmatpush.msrb.mxu3 %v2040_v10 }
 0x907   : > { %2074 = vmatpush.msrb.mxu2 %v2025_v7 }
 0x909   : > { %2075 = vmatpush.msrb.mxu2 %v2024_v9 }
 0x971   : > { %v1922_v34 = vpop.xlane.xlu0 %1921 }
 0x972   : > { %v1923_v35 = vmul.f32 %v1922_v34, %v4220_v58 }
 0x974   : > { %v1924_v38 = vadd.f32 1e-05, %v1923_v35 }
 0x976   : > { %2868 = vrsqrt.f32 %v1924_v38  ;;  %vm1931_vm15 = vweird.f32 %v1924_v38 }
 0x97c   : > { %v2869_v47 = vpop.eup %2868 }
 0x97d   : > { %v1926_v50 = vmul.f32 %v2869_v47, %v1924_v38  ;;  %vm1932_vm14 = vweird.f32 %v2869_v47 }
 0x97e   : > { %vm1933_vm0 = vmor %vm1931_vm15, %vm1932_vm14 }
 0x97f   : > { %v1927_v53 = vmul.f32 %v2869_v47, %v1926_v50 }
 0x981   : > { %v1928_v56 = vmul.f32 0.5, %v1927_v53 }
 0x983   : > { %v1929_v59 = vsub.f32 1.5, %v1928_v56 }
 0x985   : > { %v1930_v63 = vmul.f32 %v2869_v47, %v1929_v59 }
 0x987   : > { %v1934_v1 = vsel %vm1933_vm0, %v2869_v47, %v1930_v63 }
 0x988   : > { %v1935_v2 = vmul.f32 %v1934_v1, %v4223_v61  ;;  %v1976_v61 = vld [vmem:[%s4021_s25] sm:$0x3] }
 0x989   : > { %v1978_v11 = vperm.slane %v1976_v61, 0  ;;  %v1979_v12 = vperm.slane %v1976_v61, 1 }
 0x98a   : > { %v1939_v3 = vmul.f32 %v2829_v0, %v1935_v2 }
 0x98c   : > { %v1943_v4 = vadd.f32 %v2830_v30, %v1939_v3 }
 0x98e   : > { %1998 = vmatmul.f32.vlgmr.msrb.gmra.mxu0 %v1943_v4  ;;  %2018 = vmatmul.f32.vlgmr.msrb.gmra.mxu1 %v1943_v4 }
 0xa0b   : > { %v1999_v13 = vpop.f32.mrf.mxu0  ;;  %v2019_v14 = vpop.f32.mrf.mxu1 }
 0xa0c   : > { %v2000_v15 = vadd.f32 %v1999_v13, %v1978_v11  ;;  %v2020_v16 = vadd.f32 %v2019_v14, %v1979_v12 }
 0xa0e   : > { %v2022_v17 = vmax.f32 %v2000_v15, 0.0  ;;  %v2023_v19 = vmax.f32 %v2020_v16, 0.0 }
 0xa10   : > { %2076 = vmatmul.f32.vlgmr.msrb.gmra.mxu2 %v2022_v17  ;;  %2096 = vmatmul.f32.vlgmr.msrb.gmra.mxu3 %v2023_v19 }
 0xa93   : > { %v2077_v21 = vpop.f32.mrf.mxu2  ;;  %v2097_v23 = vpop.f32.mrf.mxu3 }
 0xa94   : > { %v2078_v22 = vadd.f32 %v2831_v20, %v2077_v21 }
 0xa96   : > { %v2098_v24 = vadd.f32 %v2097_v23, %v2078_v22 }
 0xa98   : > { %v2100_v25 = vadd.f32 %v2098_v24, %v1943_v4 }
 0xa9a   : > { %2103 = vadd.xlane.f32.xlu2 %v2100_v25 }
 0xb0d   : > { %v2104_v26 = vpop.xlane.xlu2 %2103 }
 0xb0e   : > { %v2105_v27 = vmul.f32 %v2104_v26, %v4220_v58 }
 0xb10   : > { %v2106_v28 = vsub.f32 %v2100_v25, %v2105_v27 }
 0xb12   : > { %v2107_v29 = vmul.f32 %v2106_v28, %v2106_v28 }
 0xb14   : > { %2108 = vadd.xlane.f32.xlu1 %v2107_v29 }
 0xb87   : > { %v2109_v31 = vpop.xlane.xlu1 %2108 }
 0xb88   : > { %v2110_v32 = vmul.f32 %v2109_v31, %v4220_v58 }
 0xb8a   : > { %v2111_v33 = vadd.f32 1e-05, %v2110_v32 }
 0xb8c   : > { %2870 = vrsqrt.f32 %v2111_v33  ;;  %vm2118_vm2 = vweird.f32 %v2111_v33 }
 0xb92   : > { %v2871_v34 = vpop.eup %2870 }
 0xb93   : > { %v2113_v35 = vmul.f32 %v2871_v34, %v2111_v33  ;;  %vm2119_vm1 = vweird.f32 %v2871_v34 }
 0xb94   : > { %vm2120_vm3 = vmor %vm2118_vm2, %vm2119_vm1 }
 0xb95   : > { %v2114_v36 = vmul.f32 %v2871_v34, %v2113_v35 }
 0xb97   : > { %v2115_v37 = vmul.f32 0.5, %v2114_v36 }
 0xb99   : > { %v2116_v38 = vsub.f32 1.5, %v2115_v37 }
 0xb9b   : > { %v2117_v39 = vmul.f32 %v2871_v34, %v2116_v38 }
 0xb9d   : > { %v2121_v41 = vsel %vm2120_vm3, %v2871_v34, %v2117_v39 }
 0xb9e   : > { %v2122_v43 = vmul.f32 %v2121_v41, %v2106_v28 }
 0xba0   : > { %v2126_v44 = vmul.f32 %v2832_v40, %v2122_v43  ;;  %2135 = sbr.rel (%p2654_p4) target bundleno = 3148 (0xc4c), region = 180 }
 0xba2   : > { %v4302_v45 = vadd.f32 %v2833_v42, %v2126_v44 }
 0xba4   : > { %2131 = vst [vmem:[#allocation2] sm:$0xff] %v4302_v45 }
 0xba5   : > { %v2183_v58 = vld [vmem:[#allocation30 + $0x178] sm:$0xff]  ;;  %v2180_v46 = vld [vmem:[#allocation30 + $0x160] sm:$0xff]  ;;  %v2181_v47 = vld [vmem:[#allocation30 + $0x168] sm:$0xff] }
 0xba6   : > { %2232 = vmatpush.msra.mxu2 %v2183_v58  ;;  %v2182_v48 = vld [vmem:[#allocation30 + $0x170] sm:$0xff]  ;;  %v2177_v49 = vld [vmem:[#allocation30 + $0x148] sm:$0xff]  ;;  %2192 = vmatpush.msra.mxu0 %v2181_v47  ;;  %v2179_v51 = vld [vmem:[#allocation30 + $0x158] sm:$0xff] }
 0xba7   : > { %2212 = vmatpush.msra.mxu1 %v2182_v48  ;;  %v2178_v50 = vld [vmem:[#allocation30 + $0x150] sm:$0xff]  ;;  %v2175_v52 = vld [vmem:[#allocation30 + $0x138] sm:$0xff]  ;;  %v2176_v53 = vld [vmem:[#allocation30 + $0x140] sm:$0xff] }
 0xba8   : > { %2233 = vmatpush.msra.mxu2 %v2180_v46  ;;  %v2174_v54 = vld [vmem:[#allocation30 + $0x130] sm:$0xff]  ;;  %2193 = vmatpush.msra.mxu0 %v2178_v50  ;;  %v2172_v55 = vld [vmem:[#allocation30 + $0x120] sm:$0xff]  ;;  %v2173_v56 = vld [vmem:[#allocation30 + $0x128] sm:$0xff] }
 0xba9   : > { %2213 = vmatpush.msra.mxu1 %v2179_v51  ;;  %v2171_v57 = vld [vmem:[#allocation30 + $0x118] sm:$0xff]  ;;  %v2169_v18 = vld [vmem:[#allocation30 + $0x108] sm:$0xff]  ;;  %v2170_v59 = vld [vmem:[#allocation30 + $0x110] sm:$0xff] }
 0xbaa   : > { %2234 = vmatpush.msra.mxu2 %v2177_v49  ;;  %2194 = vmatpush.msra.mxu0 %v2175_v52  ;;  %v2168_v60 = vld [vmem:[#allocation30 + $0x100] sm:$0xff]  ;;  %v2166_v62 = vld [vmem:[#allocation30 + $0xf0] sm:$0xff]  ;;  %v2167_v63 = vld [vmem:[#allocation30 + $0xf8] sm:$0xff] }
 0xbab   : > { %2214 = vmatpush.msra.mxu1 %v2176_v53  ;;  %v2165_v0 = vld [vmem:[#allocation30 + $0xe8] sm:$0xff]  ;;  %v2163_v1 = vld [vmem:[#allocation30 + $0xd8] sm:$0xff]  ;;  %v2164_v2 = vld [vmem:[#allocation30 + $0xe0] sm:$0xff] }
 0xbac   : > { %2235 = vmatpush.msra.mxu2 %v2174_v54  ;;  %2195 = vmatpush.msra.mxu0 %v2172_v55  ;;  %v2162_v30 = vld [vmem:[#allocation30 + $0xd0] sm:$0xff]  ;;  %v2160_v3 = vld [vmem:[#allocation30 + $0xc0] sm:$0xff]  ;;  %v2161_v4 = vld [vmem:[#allocation30 + $0xc8] sm:$0xff] }
 0xbad   : > { %2215 = vmatpush.msra.mxu1 %v2173_v56  ;;  %v2159_v5 = vld [vmem:[#allocation30 + $0xb8] sm:$0xff]  ;;  %v2157_v6 = vld [vmem:[#allocation30 + $0xa8] sm:$0xff]  ;;  %v2158_v7 = vld [vmem:[#allocation30 + $0xb0] sm:$0xff] }
 0xbae   : > { %2236 = vmatpush.msra.mxu2 %v2171_v57  ;;  %2196 = vmatpush.msra.mxu0 %v2169_v18  ;;  %v2156_v8 = vld [vmem:[#allocation30 + $0xa0] sm:$0xff]  ;;  %v2154_v9 = vld [vmem:[#allocation30 + $0x90] sm:$0xff]  ;;  %v2155_v10 = vld [vmem:[#allocation30 + $0x98] sm:$0xff] }
 0xbaf   : > { %2216 = vmatpush.msra.mxu1 %v2170_v59  ;;  %v2153_v61 = vld [vmem:[#allocation30 + $0x88] sm:$0xff]  ;;  %v2151_v11 = vld [vmem:[#allocation30 + $0x78] sm:$0xff]  ;;  %v2152_v12 = vld [vmem:[#allocation30 + $0x80] sm:$0xff] }
 0xbb0   : > { %2237 = vmatpush.msra.mxu2 %v2168_v60  ;;  %2197 = vmatpush.msra.mxu0 %v2166_v62  ;;  %v2150_v13 = vld [vmem:[#allocation30 + $0x70] sm:$0xff]  ;;  %v2148_v14 = vld [vmem:[#allocation30 + $0x60] sm:$0xff]  ;;  %v2149_v15 = vld [vmem:[#allocation30 + $0x68] sm:$0xff] }
 0xbb1   : > { %2217 = vmatpush.msra.mxu1 %v2167_v63  ;;  %v2147_v16 = vld [vmem:[#allocation30 + $0x58] sm:$0xff]  ;;  %v2145_v17 = vld [vmem:[#allocation30 + $0x48] sm:$0xff]  ;;  %v2146_v19 = vld [vmem:[#allocation30 + $0x50] sm:$0xff] }
 0xbb2   : > { %2238 = vmatpush.msra.mxu2 %v2165_v0  ;;  %2198 = vmatpush.msra.mxu0 %v2163_v1  ;;  %v2144_v20 = vld [vmem:[#allocation30 + $0x40] sm:$0xff]  ;;  %v2142_v21 = vld [vmem:[#allocation30 + $0x30] sm:$0xff]  ;;  %v2143_v22 = vld [vmem:[#allocation30 + $0x38] sm:$0xff] }
 0xbb3   : > { %2218 = vmatpush.msra.mxu1 %v2164_v2  ;;  %v2141_v23 = vld [vmem:[#allocation30 + $0x28] sm:$0xff]  ;;  %v2139_v24 = vld [vmem:[#allocation30 + $0x18] sm:$0xff]  ;;  %v2140_v25 = vld [vmem:[#allocation30 + $0x20] sm:$0xff] }
 0xbb4   : > { %2239 = vmatpush.msra.mxu2 %v2162_v30  ;;  %2199 = vmatpush.msra.mxu0 %v2160_v3  ;;  %v2138_v26 = vld [vmem:[#allocation30 + $0x10] sm:$0xff]  ;;  %v2136_v27 = vld [vmem:[#allocation30] sm:$0xff]  ;;  %v2137_v28 = vld [vmem:[#allocation30 + $0x8] sm:$0xff] }
 0xbb5   : > { %2219 = vmatpush.msra.mxu1 %v2161_v4  ;;  %v2184_v29 = vld [vmem:[#allocation32] sm:$0x7] }
 0xbb6   : > { %2240 = vmatpush.msra.mxu2 %v2159_v5  ;;  %2200 = vmatpush.msra.mxu0 %v2157_v6  ;;  %v2186_v31 = vperm.slane %v2184_v29, 0  ;;  %v2187_v32 = vperm.slane %v2184_v29, 1  ;;  %v2188_v37 = vperm.slane %v2184_v29, 2 }
 0xbb7   : > { %2220 = vmatpush.msra.mxu1 %v2158_v7 }
 0xbb8   : > { %2241 = vmatpush.msra.mxu2 %v2156_v8  ;;  %2201 = vmatpush.msra.mxu0 %v2154_v9 }
 0xbb9   : > { %2221 = vmatpush.msra.mxu1 %v2155_v10 }
 0xbba   : > { %2242 = vmatpush.msra.mxu2 %v2153_v61  ;;  %2202 = vmatpush.msra.mxu0 %v2151_v11 }
 0xbbb   : > { %2222 = vmatpush.msra.mxu1 %v2152_v12 }
 0xbbc   : > { %2243 = vmatpush.msra.mxu2 %v2150_v13  ;;  %2203 = vmatpush.msra.mxu0 %v2148_v14 }
 0xbbd   : > { %2223 = vmatpush.msra.mxu1 %v2149_v15 }
 0xbbe   : > { %2244 = vmatpush.msra.mxu2 %v2147_v16  ;;  %2204 = vmatpush.msra.mxu0 %v2145_v17 }
 0xbbf   : > { %2224 = vmatpush.msra.mxu1 %v2146_v19 }
 0xbc0   : > { %2245 = vmatpush.msra.mxu2 %v2144_v20  ;;  %2205 = vmatpush.msra.mxu0 %v2142_v21 }
 0xbc1   : > { %2225 = vmatpush.msra.mxu1 %v2143_v22 }
 0xbc2   : > { %2246 = vmatpush.msra.mxu2 %v2141_v23  ;;  %2206 = vmatpush.msra.mxu0 %v2139_v24 }
 0xbc3   : > { %2226 = vmatpush.msra.mxu1 %v2140_v25 }
 0xbc4   : > { %2247 = vmatpush.msra.mxu2 %v2138_v26  ;;  %2207 = vmatpush.msra.mxu0 %v2136_v27 }
 0xbc5   : > { %2248 = vmatmul.f32.vlgmr.msra.gmra.mxu2 %v4302_v45  ;;  %2227 = vmatpush.msra.mxu1 %v2137_v28 }
 0xbc6   : > { %2208 = vmatmul.f32.vlgmr.msra.gmra.mxu0 %v4302_v45  ;;  %2228 = vmatmul.f32.vlgmr.msra.gmra.mxu1 %v4302_v45 }
 0xc43   : > { %v2209_v33 = vpop.f32.mrf.mxu0  ;;  %v2229_v35 = vpop.f32.mrf.mxu1 }
 0xc44   : > { %v2210_v34 = vadd.f32 %v2209_v33, %v2186_v31  ;;  %v2230_v36 = vadd.f32 %v2229_v35, %v2187_v32 }
 0xc46   : > { %2252 = vst [vmem:[#allocation33] sm:$0xff] %v2210_v34 }
 0xc47   : > { %2253 = vst [vmem:[#allocation33 + $0x8] sm:$0xff] %v2230_v36 }
 0xc48   : > { %v2249_v38 = vpop.f32.mrf.mxu2 }
 0xc49   : > { %v2250_v39 = vadd.f32 %v2249_v38, %v2188_v37 }
 0xc4b   : > { %2254 = vst [vmem:[#allocation33 + $0x10] sm:$0xff] %v2250_v39 }
 0xc4c PF: > { %s4412_s23 = sld [smem:[#allocation46_spill]]  ;;  %s3548_s30 = smov [#allocation33]  }
 0xc4d   : > { %s2261_s21 = sshll.u32 %s3548_s30, 4  ;;  %s4413_s4 = sld [smem:[#allocation62_spill]]  ;;  %s2262_s21 = int_to_ptr.vmem [resolvable:$true] %s2261_s21 }
 0xc52   : > { %p2760_p5 = scmp.eq.s32.totalorder %s4412_s23, 5 }
 0xc53   : > { %s2263_s19 = sshll.u32 %s4413_s4, 4  ;;  %s2264_s19 = int_to_ptr.hbm [resolvable:$true] %s2263_s19 }
 0xc54   : > { %2721 = dma.vmem_to_hbm [thread:$0]  (%p2760_p5), %s2262_s21, 384, %s2264_s19, [#allocation5]  }
 0xc55   : > { %3503 = dma.done.wait (%p2760_p5), [#allocation5], 384  }
 0xc56   : > { %3505 = vsyncadd (%p2760_p5), [#allocation5], 4294966912 }
 0xc57 PF: > { %s4414_s21 = sld [smem:[#allocation47_spill]]  ;;  %s4417_s30 = smov %s3516_s20 }
 0xc58   : > { %s4415_s0 = sld [smem:[#allocation45_spill]] }
 0xc59   : > { %s4416_s1 = sld [smem:[#allocation48_spill]] }
 0xc5d   : > { %p49_p8 = scmp.ge.s32.totalorder %s4414_s21, 8  }
 0xc5f   : > { %s4418_s20 = smov %s4416_s1  ;;  %51 = sbr.rel (!%p49_p8) target bundleno = 31 (0x1f), region = 301 }
 0xc64   :  { %2277 = vsyncpa [#allocation4], 1 }
 0xc65   :  { %2279 = vsyncpa [#allocation4 + $0x1], 1 }
 0xc66   :  { %2280 = vsyncpa [#allocation7], 1 }
 0xc67   :  { %2281 = vsyncpa [#allocation10], 1 }
 0xc68   :  { %2282 = vsyncpa [#allocation13], 1 }
 0xc69   :  { %2284 = vsyncpa [#allocation13 + $0x1], 1 }
 0xc6a   :  { %2285 = vsyncpa [#allocation16], 1 }
 0xc6b   :  { %2287 = vsyncpa [#allocation16 + $0x1], 1 }
 0xc6c   :  { %2288 = vsyncpa [#allocation19], 1 }
 0xc6d   :  { %2290 = vsyncpa [#allocation19 + $0x1], 1 }
 0xc6e   :  { %2291 = vsyncpa [#allocation22], 1 }
 0xc6f   :  { %2293 = vsyncpa [#allocation22 + $0x1], 1 }
 0xc70   :  { %2294 = vsyncpa [#allocation25], 1 }
 0xc71   :  { %2296 = vsyncpa [#allocation25 + $0x1], 1 }
 0xc72   :  { %2297 = vsyncpa [#allocation28], 1 }
 0xc73   :  { %2299 = vsyncpa [#allocation28 + $0x1], 1 }
 0xc74   :  { %2300 = vsyncpa [#allocation31], 1 }
 0xc75   :  { %2301 = vsyncpa [#allocation5], 1 }
 0xc76   :  { %2303 = vsyncpa [#allocation5 + $0x1], 1 }

</bundles_post_ra>
